<compile_context>
chip_gen: v5e
topology: v5e:2x2
jax: 0.10.0
libtpu: 0.0.40
codegen_flags: <defaults>
</compile_context>

<pallas_src>
import functools

import jax
import jax.numpy as jnp
from jax.experimental import pallas as pl
from jax.experimental.pallas import tpu as pltpu

# Channel configuration implied by register_vars() / model_depth = 2.
IN_CH, OUT_CH = 1, 1
C1, C2 = 8, 16


def _round_up(x, m):
    return (x + m - 1) // m * m


def _param_layout():
    """Row offsets / padded shape of the single packed weight+bias buffer."""
    off1 = 0
    off2 = _round_up(off1 + C1, 8)
    off3 = _round_up(off2 + C2, 8)
    pr = _round_up(off3 + OUT_CH, 8)
    pc = _round_up(9 * max(IN_CH, C1, C2) + 1, 128)
    return off1, off2, off3, pr, pc


def _fused_cnn_kernel(x_ref, m_ref, p_ref, o_ref, *, W, c1, c2, cout,
                      off1, off2, off3):
    """Fused enc1 -> enc2 -> dec forward, whole (batch-folded) image in VMEM.

    x_ref : (1, N)   input, N = bc*H*W (batch folded onto lanes)
    m_ref : (9, N)   per-tap border-validity masks (f32 0/1)
    p_ref : (PR, PC) packed weights+biases (tap-major, bias in last column)
    o_ref : (1, N)   output
    """
    N = x_ref.shape[1]

    def tap(x, t):
        # Masked shifted copy of x for 3x3 tap t (SAME zero padding).  Samples
        # that wrap across an image (or batch) boundary are exactly the
        # zero-padded taps and are zeroed by the per-image mask row.
        dr, dc = t // 3 - 1, t % 3 - 1
        shift = dr * W + dc
        if shift == 0:
            return x
        rolled = pltpu.roll(x, shift=(-shift) % N, axis=1)
        return rolled * m_ref[t:t + 1, :]

    # ---- enc1: Cin == 1, so skip im2col/MXU entirely -> 9 VPU broadcast-FMAs.
    x0 = x_ref[...]                                           # (1, N)
    acc = p_ref[off1:off1 + c1, 9:10]                         # bias (c1, 1)
    for t in range(9):
        acc = acc + p_ref[off1:off1 + c1, t:t + 1] * tap(x0, t)
    a1 = jnp.maximum(acc, 0.0)                                # (c1, N)

    # ---- grouped im2col conv: 3 accumulating matmuls of 3 taps each keeps
    # simultaneously-live patch vregs low.
    def conv_grouped(x, w_off, cin, co, relu):
        acc = None
        for g in range(3):
            chunk = jnp.concatenate(
                [tap(x, 3 * g), tap(x, 3 * g + 1), tap(x, 3 * g + 2)], axis=0)
            wg = p_ref[w_off:w_off + co, 3 * g * cin:3 * (g + 1) * cin]
            part = jnp.dot(wg, chunk, preferred_element_type=jnp.float32)
            acc = part if acc is None else acc + part
        acc = acc + p_ref[w_off:w_off + co, 9 * cin:9 * cin + 1]   # bias col
        return jnp.maximum(acc, 0.0) if relu else acc

    a2 = conv_grouped(a1, off2, c1, c2, relu=True)            # (c2, N)
    o_ref[...] = conv_grouped(a2, off3, c2, cout, relu=False)  # (1, N)


def _make_tap_masks(bc, H, W):
    """(9, bc*H*W) f32 validity masks for the 9 taps, tiled per image."""
    HW = H * W
    flat = jnp.arange(HW, dtype=jnp.int32)
    row = flat // W
    col = flat % W
    m = jnp.stack(
        [((row + dr >= 0) & (row + dr < H) &
          (col + dc >= 0) & (col + dc < W)).astype(jnp.float32)
         for dr in (-1, 0, 1) for dc in (-1, 0, 1)],
        axis=0)                                               # (9, HW)
    return jnp.tile(m, (1, bc))                               # (9, bc*HW)


def prepare_params(params):
    """Pack all conv weights + biases into ONE lane-padded f32 buffer.

    Done once, outside jit.  Layout per layer block (rows 8-aligned):
      cols [0 : 9*Cin)        weight, tap-major then input channel
      col  [9*Cin]            bias
    """
    off1, off2, off3, pr, pc = _param_layout()
    buf = jnp.zeros((pr, pc), jnp.float32)

    def put(buf, off, w, b):
        cout, cin = w.shape[0], w.shape[1]
        wm = jnp.transpose(w, (0, 2, 3, 1)).reshape(cout, 9 * cin)
        blk = jnp.concatenate([wm, b.reshape(cout, 1)], axis=1)
        return buf.at[off:off + cout, 0:9 * cin + 1].set(blk.astype(jnp.float32))

    buf = put(buf, off1, *params["enc1"])
    buf = put(buf, off2, *params["enc2"])
    buf = put(buf, off3, *params["dec"])
    return buf


@jax.jit
def forward(packed, x_nchw):
    """Fused forward pass. Input NCHW (PyTorch convention), output NCHW."""
    B, cin, H, W = x_nchw.shape
    assert cin == IN_CH == 1 and OUT_CH == 1, "batch folding relies on cin=cout=1"
    HW = H * W

    # Batch chunk folded onto lanes.  Whole batch in one grid step for small B;
    # groups of 8 images per step (lane width >= 2048) for larger B.
    bc = B if B <= 8 else next(d for d in (8, 4, 2, 1) if B % d == 0)
    N = bc * HW
    assert N % 128 == 0, "bc*H*W must be a multiple of 128 for lane-dense tiles"

    off1, off2, off3, pr, pc = _param_layout()
    assert packed.shape == (pr, pc)

    x_flat = x_nchw.reshape(1, B * HW).astype(jnp.float32)    # free reshape
    masks = _make_tap_masks(bc, H, W)                         # compile-time const

    kernel = functools.partial(
        _fused_cnn_kernel, W=W, c1=C1, c2=C2, cout=OUT_CH,
        off1=off1, off2=off2, off3=off3)

    out = pl.pallas_call(
        kernel,
        out_shape=jax.ShapeDtypeStruct((1, B * HW), jnp.float32),
        grid_spec=pltpu.PrefetchScalarGridSpec(
            num_scalar_prefetch=0,
            grid=(B // bc,),
            in_specs=[
                pl.BlockSpec((1, N), lambda i: (0, i)),       # batch-chunk of x
                pl.BlockSpec((9, N), lambda i: (0, 0)),       # tap masks (resident)
                pl.BlockSpec((pr, pc), lambda i: (0, 0)),     # packed weights
            ],
            out_specs=pl.BlockSpec((1, N), lambda i: (0, i)),
        ),
        # One step for small B; for large B the chunks shard across v7x's TCs.
        compiler_params=pltpu.CompilerParams(
            dimension_semantics=("parallel",)),
    )(x_flat, masks, packed)
    return out.reshape(B, OUT_CH, H, W)


def init_params(key):
    """Deterministic synthetic parameters (PyTorch OIHW conv layout)."""
    keys = jax.random.split(key, 6)

    def conv_init(kw, kb, cin, cout):
        fan_in = cin * 9
        w = jax.random.normal(kw, (cout, cin, 3, 3), jnp.float32)
        w = w * (2.0 / fan_in) ** 0.5
        b = 0.1 * jax.random.normal(kb, (cout,), jnp.float32)
        return w, b

    return {
        "enc1": conv_init(keys[0], keys[1], IN_CH, C1),
        "enc2": conv_init(keys[2], keys[3], C1, C2),
        "dec": conv_init(keys[4], keys[5], C2, OUT_CH),
    }


def _reference_forward(params, x_nchw):
    """Pure-JAX reference (lax conv) for correctness check."""
    x = x_nchw.astype(jnp.float32)

    def conv(x, w, b, relu):
        y = jax.lax.conv_general_dilated(
            x, w, window_strides=(1, 1), padding="SAME",
            dimension_numbers=("NCHW", "OIHW", "NCHW"))
        y = y + b.reshape(1, -1, 1, 1)
        return jnp.maximum(y, 0.0) if relu else y

    x = conv(x, *params["enc1"], True)
    x = conv(x, *params["enc2"], True)
    x = conv(x, *params["dec"], False)
    return x


if __name__ == "__main__":
    key = jax.random.PRNGKey(0)
    k_param, k_x = jax.random.split(key)

    params = init_params(k_param)
    packed = prepare_params(params)          # one-time host-side packing
    # inChannels = 1 per register_vars(); small spatial size.
    x = jax.random.normal(k_x, (2, 1, 16, 16), jnp.float32)

    out = jax.block_until_ready(forward(packed, x))
    ref = jax.block_until_ready(_reference_forward(params, x))

    assert out.shape == (2, 1, 16, 16), out.shape
    max_err = float(jnp.max(jnp.abs(out - ref)))
    assert jnp.allclose(out, ref, atol=1e-4, rtol=1e-4), max_err
    print("KERNEL_OK")
</pallas_src>

<mosaic_0001>
module attributes {stable_mosaic.version = 11 : i64} {
  func.func @_fused_cnn_kernel(%arg0: i32, %arg1: memref<1x512xf32, #tpu.memory_space<vmem>>, %arg2: memref<9x512xf32, #tpu.memory_space<vmem>>, %arg3: memref<32x256xf32, #tpu.memory_space<vmem>>, %arg4: memref<1x512xf32, #tpu.memory_space<vmem>>) attributes {dimension_semantics = [#tpu.dimension_semantics<parallel>], iteration_bounds = array<i64: 1>, scalar_prefetch = 0 : i64, scratch_operands = 0 : i64, tpu.core_type = #tpu.core_type<tc>, window_params = [{transform_indices = @transform_0, window_bounds = array<i64: 1, 512>}, {pipeline_mode = #tpu.pipeline_mode<synchronous>, transform_indices = @transform_1, window_bounds = array<i64: 9, 512>}, {pipeline_mode = #tpu.pipeline_mode<synchronous>, transform_indices = @transform_2, window_bounds = array<i64: 32, 256>}, {transform_indices = @transform_3, window_bounds = array<i64: 1, 512>}]} {
    %c0 = arith.constant 0 : index
    %c0_0 = arith.constant 0 : index
    %0 = vector.load %arg1[%c0, %c0_0] : memref<1x512xf32, #tpu.memory_space<vmem>>, vector<1x512xf32>
    %c0_1 = arith.constant 0 : index
    %c9 = arith.constant 9 : index
    %1 = vector.load %arg3[%c0_1, %c9] : memref<32x256xf32, #tpu.memory_space<vmem>>, vector<8x1xf32>
    %c0_2 = arith.constant 0 : index
    %c0_3 = arith.constant 0 : index
    %2 = vector.load %arg3[%c0_2, %c0_3] : memref<32x256xf32, #tpu.memory_space<vmem>>, vector<8x1xf32>
    %c17_i32 = arith.constant 17 : i32
    %3 = tpu.dynamic_rotate %0 by %c17_i32 dim 1 : vector<1x512xf32>, i32 -> vector<1x512xf32>
    %c0_4 = arith.constant 0 : index
    %c0_5 = arith.constant 0 : index
    %4 = vector.load %arg2[%c0_4, %c0_5] : memref<9x512xf32, #tpu.memory_space<vmem>>, vector<1x512xf32>
    %5 = arith.mulf %3, %4 : vector<1x512xf32>
    %6 = vector.broadcast %2 : vector<8x1xf32> to vector<8x512xf32>
    %7 = vector.broadcast %5 : vector<1x512xf32> to vector<8x512xf32>
    %8 = arith.mulf %6, %7 : vector<8x512xf32>
    %9 = vector.broadcast %1 : vector<8x1xf32> to vector<8x512xf32>
    %10 = arith.addf %9, %8 : vector<8x512xf32>
    %c0_6 = arith.constant 0 : index
    %c1 = arith.constant 1 : index
    %11 = vector.load %arg3[%c0_6, %c1] : memref<32x256xf32, #tpu.memory_space<vmem>>, vector<8x1xf32>
    %c16_i32 = arith.constant 16 : i32
    %12 = tpu.dynamic_rotate %0 by %c16_i32 dim 1 : vector<1x512xf32>, i32 -> vector<1x512xf32>
    %c1_7 = arith.constant 1 : index
    %c0_8 = arith.constant 0 : index
    %13 = vector.load %arg2[%c1_7, %c0_8] : memref<9x512xf32, #tpu.memory_space<vmem>>, vector<1x512xf32>
    %14 = arith.mulf %12, %13 : vector<1x512xf32>
    %15 = vector.broadcast %11 : vector<8x1xf32> to vector<8x512xf32>
    %16 = vector.broadcast %14 : vector<1x512xf32> to vector<8x512xf32>
    %17 = arith.mulf %15, %16 : vector<8x512xf32>
    %18 = arith.addf %10, %17 : vector<8x512xf32>
    %c0_9 = arith.constant 0 : index
    %c2 = arith.constant 2 : index
    %19 = vector.load %arg3[%c0_9, %c2] : memref<32x256xf32, #tpu.memory_space<vmem>>, vector<8x1xf32>
    %c15_i32 = arith.constant 15 : i32
    %20 = tpu.dynamic_rotate %0 by %c15_i32 dim 1 : vector<1x512xf32>, i32 -> vector<1x512xf32>
    %c2_10 = arith.constant 2 : index
    %c0_11 = arith.constant 0 : index
    %21 = vector.load %arg2[%c2_10, %c0_11] : memref<9x512xf32, #tpu.memory_space<vmem>>, vector<1x512xf32>
    %22 = arith.mulf %20, %21 : vector<1x512xf32>
    %23 = vector.broadcast %19 : vector<8x1xf32> to vector<8x512xf32>
    %24 = vector.broadcast %22 : vector<1x512xf32> to vector<8x512xf32>
    %25 = arith.mulf %23, %24 : vector<8x512xf32>
    %26 = arith.addf %18, %25 : vector<8x512xf32>
    %c0_12 = arith.constant 0 : index
    %c3 = arith.constant 3 : index
    %27 = vector.load %arg3[%c0_12, %c3] : memref<32x256xf32, #tpu.memory_space<vmem>>, vector<8x1xf32>
    %c1_i32 = arith.constant 1 : i32
    %28 = tpu.dynamic_rotate %0 by %c1_i32 dim 1 : vector<1x512xf32>, i32 -> vector<1x512xf32>
    %c3_13 = arith.constant 3 : index
    %c0_14 = arith.constant 0 : index
    %29 = vector.load %arg2[%c3_13, %c0_14] : memref<9x512xf32, #tpu.memory_space<vmem>>, vector<1x512xf32>
    %30 = arith.mulf %28, %29 : vector<1x512xf32>
    %31 = vector.broadcast %27 : vector<8x1xf32> to vector<8x512xf32>
    %32 = vector.broadcast %30 : vector<1x512xf32> to vector<8x512xf32>
    %33 = arith.mulf %31, %32 : vector<8x512xf32>
    %34 = arith.addf %26, %33 : vector<8x512xf32>
    %c0_15 = arith.constant 0 : index
    %c4 = arith.constant 4 : index
    %35 = vector.load %arg3[%c0_15, %c4] : memref<32x256xf32, #tpu.memory_space<vmem>>, vector<8x1xf32>
    %36 = vector.broadcast %35 : vector<8x1xf32> to vector<8x512xf32>
    %37 = vector.broadcast %0 : vector<1x512xf32> to vector<8x512xf32>
    %38 = arith.mulf %36, %37 : vector<8x512xf32>
    %39 = arith.addf %34, %38 : vector<8x512xf32>
    %c0_16 = arith.constant 0 : index
    %c5 = arith.constant 5 : index
    %40 = vector.load %arg3[%c0_16, %c5] : memref<32x256xf32, #tpu.memory_space<vmem>>, vector<8x1xf32>
    %c511_i32 = arith.constant 511 : i32
    %41 = tpu.dynamic_rotate %0 by %c511_i32 dim 1 : vector<1x512xf32>, i32 -> vector<1x512xf32>
    %c5_17 = arith.constant 5 : index
    %c0_18 = arith.constant 0 : index
    %42 = vector.load %arg2[%c5_17, %c0_18] : memref<9x512xf32, #tpu.memory_space<vmem>>, vector<1x512xf32>
    %43 = arith.mulf %41, %42 : vector<1x512xf32>
    %44 = vector.broadcast %40 : vector<8x1xf32> to vector<8x512xf32>
    %45 = vector.broadcast %43 : vector<1x512xf32> to vector<8x512xf32>
    %46 = arith.mulf %44, %45 : vector<8x512xf32>
    %47 = arith.addf %39, %46 : vector<8x512xf32>
    %c0_19 = arith.constant 0 : index
    %c6 = arith.constant 6 : index
    %48 = vector.load %arg3[%c0_19, %c6] : memref<32x256xf32, #tpu.memory_space<vmem>>, vector<8x1xf32>
    %c497_i32 = arith.constant 497 : i32
    %49 = tpu.dynamic_rotate %0 by %c497_i32 dim 1 : vector<1x512xf32>, i32 -> vector<1x512xf32>
    %c6_20 = arith.constant 6 : index
    %c0_21 = arith.constant 0 : index
    %50 = vector.load %arg2[%c6_20, %c0_21] : memref<9x512xf32, #tpu.memory_space<vmem>>, vector<1x512xf32>
    %51 = arith.mulf %49, %50 : vector<1x512xf32>
    %52 = vector.broadcast %48 : vector<8x1xf32> to vector<8x512xf32>
    %53 = vector.broadcast %51 : vector<1x512xf32> to vector<8x512xf32>
    %54 = arith.mulf %52, %53 : vector<8x512xf32>
    %55 = arith.addf %47, %54 : vector<8x512xf32>
    %c0_22 = arith.constant 0 : index
    %c7 = arith.constant 7 : index
    %56 = vector.load %arg3[%c0_22, %c7] : memref<32x256xf32, #tpu.memory_space<vmem>>, vector<8x1xf32>
    %c496_i32 = arith.constant 496 : i32
    %57 = tpu.dynamic_rotate %0 by %c496_i32 dim 1 : vector<1x512xf32>, i32 -> vector<1x512xf32>
    %c7_23 = arith.constant 7 : index
    %c0_24 = arith.constant 0 : index
    %58 = vector.load %arg2[%c7_23, %c0_24] : memref<9x512xf32, #tpu.memory_space<vmem>>, vector<1x512xf32>
    %59 = arith.mulf %57, %58 : vector<1x512xf32>
    %60 = vector.broadcast %56 : vector<8x1xf32> to vector<8x512xf32>
    %61 = vector.broadcast %59 : vector<1x512xf32> to vector<8x512xf32>
    %62 = arith.mulf %60, %61 : vector<8x512xf32>
    %63 = arith.addf %55, %62 : vector<8x512xf32>
    %c0_25 = arith.constant 0 : index
    %c8 = arith.constant 8 : index
    %64 = vector.load %arg3[%c0_25, %c8] : memref<32x256xf32, #tpu.memory_space<vmem>>, vector<8x1xf32>
    %c495_i32 = arith.constant 495 : i32
    %65 = tpu.dynamic_rotate %0 by %c495_i32 dim 1 : vector<1x512xf32>, i32 -> vector<1x512xf32>
    %c8_26 = arith.constant 8 : index
    %c0_27 = arith.constant 0 : index
    %66 = vector.load %arg2[%c8_26, %c0_27] : memref<9x512xf32, #tpu.memory_space<vmem>>, vector<1x512xf32>
    %67 = arith.mulf %65, %66 : vector<1x512xf32>
    %68 = vector.broadcast %64 : vector<8x1xf32> to vector<8x512xf32>
    %69 = vector.broadcast %67 : vector<1x512xf32> to vector<8x512xf32>
    %70 = arith.mulf %68, %69 : vector<8x512xf32>
    %71 = arith.addf %63, %70 : vector<8x512xf32>
    %cst = arith.constant 0.000000e+00 : f32
    %72 = vector.broadcast %cst : f32 to vector<8x512xf32>
    %73 = arith.maximumf %71, %72 : vector<8x512xf32>
    %c17_i32_28 = arith.constant 17 : i32
    %74 = tpu.dynamic_rotate %73 by %c17_i32_28 dim 1 : vector<8x512xf32>, i32 -> vector<8x512xf32>
    %c0_29 = arith.constant 0 : index
    %c0_30 = arith.constant 0 : index
    %75 = vector.load %arg2[%c0_29, %c0_30] : memref<9x512xf32, #tpu.memory_space<vmem>>, vector<1x512xf32>
    %76 = vector.broadcast %75 : vector<1x512xf32> to vector<8x512xf32>
    %77 = arith.mulf %74, %76 : vector<8x512xf32>
    %c16_i32_31 = arith.constant 16 : i32
    %78 = tpu.dynamic_rotate %73 by %c16_i32_31 dim 1 : vector<8x512xf32>, i32 -> vector<8x512xf32>
    %c1_32 = arith.constant 1 : index
    %c0_33 = arith.constant 0 : index
    %79 = vector.load %arg2[%c1_32, %c0_33] : memref<9x512xf32, #tpu.memory_space<vmem>>, vector<1x512xf32>
    %80 = vector.broadcast %79 : vector<1x512xf32> to vector<8x512xf32>
    %81 = arith.mulf %78, %80 : vector<8x512xf32>
    %c15_i32_34 = arith.constant 15 : i32
    %82 = tpu.dynamic_rotate %73 by %c15_i32_34 dim 1 : vector<8x512xf32>, i32 -> vector<8x512xf32>
    %c2_35 = arith.constant 2 : index
    %c0_36 = arith.constant 0 : index
    %83 = vector.load %arg2[%c2_35, %c0_36] : memref<9x512xf32, #tpu.memory_space<vmem>>, vector<1x512xf32>
    %84 = vector.broadcast %83 : vector<1x512xf32> to vector<8x512xf32>
    %85 = arith.mulf %82, %84 : vector<8x512xf32>
    %86 = tpu.concatenate %77, %81, %85 in 0 : vector<8x512xf32>, vector<8x512xf32>, vector<8x512xf32> -> vector<24x512xf32>
    %c8_37 = arith.constant 8 : index
    %c0_38 = arith.constant 0 : index
    %87 = vector.load %arg3[%c8_37, %c0_38] : memref<32x256xf32, #tpu.memory_space<vmem>>, vector<16x24xf32>
    %cst_39 = arith.constant dense<0.000000e+00> : vector<16x512xf32>
    %88 = tpu.matmul %87, %86, %cst_39 {dimension_numbers = #tpu.dot_dimension_numbers<[1], [0], [0], [1], [0, 0, 1, 1], [], []>} : vector<16x24xf32>, vector<24x512xf32>, vector<16x512xf32> -> vector<16x512xf32>
    %c1_i32_40 = arith.constant 1 : i32
    %89 = tpu.dynamic_rotate %73 by %c1_i32_40 dim 1 : vector<8x512xf32>, i32 -> vector<8x512xf32>
    %c3_41 = arith.constant 3 : index
    %c0_42 = arith.constant 0 : index
    %90 = vector.load %arg2[%c3_41, %c0_42] : memref<9x512xf32, #tpu.memory_space<vmem>>, vector<1x512xf32>
    %91 = vector.broadcast %90 : vector<1x512xf32> to vector<8x512xf32>
    %92 = arith.mulf %89, %91 : vector<8x512xf32>
    %c511_i32_43 = arith.constant 511 : i32
    %93 = tpu.dynamic_rotate %73 by %c511_i32_43 dim 1 : vector<8x512xf32>, i32 -> vector<8x512xf32>
    %c5_44 = arith.constant 5 : index
    %c0_45 = arith.constant 0 : index
    %94 = vector.load %arg2[%c5_44, %c0_45] : memref<9x512xf32, #tpu.memory_space<vmem>>, vector<1x512xf32>
    %95 = vector.broadcast %94 : vector<1x512xf32> to vector<8x512xf32>
    %96 = arith.mulf %93, %95 : vector<8x512xf32>
    %97 = tpu.concatenate %92, %73, %96 in 0 : vector<8x512xf32>, vector<8x512xf32>, vector<8x512xf32> -> vector<24x512xf32>
    %c8_46 = arith.constant 8 : index
    %c24 = arith.constant 24 : index
    %98 = vector.load %arg3[%c8_46, %c24] : memref<32x256xf32, #tpu.memory_space<vmem>>, vector<16x24xf32>
    %cst_47 = arith.constant dense<0.000000e+00> : vector<16x512xf32>
    %99 = tpu.matmul %98, %97, %cst_47 {dimension_numbers = #tpu.dot_dimension_numbers<[1], [0], [0], [1], [0, 0, 1, 1], [], []>} : vector<16x24xf32>, vector<24x512xf32>, vector<16x512xf32> -> vector<16x512xf32>
    %100 = arith.addf %88, %99 : vector<16x512xf32>
    %c497_i32_48 = arith.constant 497 : i32
    %101 = tpu.dynamic_rotate %73 by %c497_i32_48 dim 1 : vector<8x512xf32>, i32 -> vector<8x512xf32>
    %c6_49 = arith.constant 6 : index
    %c0_50 = arith.constant 0 : index
    %102 = vector.load %arg2[%c6_49, %c0_50] : memref<9x512xf32, #tpu.memory_space<vmem>>, vector<1x512xf32>
    %103 = vector.broadcast %102 : vector<1x512xf32> to vector<8x512xf32>
    %104 = arith.mulf %101, %103 : vector<8x512xf32>
    %c496_i32_51 = arith.constant 496 : i32
    %105 = tpu.dynamic_rotate %73 by %c496_i32_51 dim 1 : vector<8x512xf32>, i32 -> vector<8x512xf32>
    %c7_52 = arith.constant 7 : index
    %c0_53 = arith.constant 0 : index
    %106 = vector.load %arg2[%c7_52, %c0_53] : memref<9x512xf32, #tpu.memory_space<vmem>>, vector<1x512xf32>
    %107 = vector.broadcast %106 : vector<1x512xf32> to vector<8x512xf32>
    %108 = arith.mulf %105, %107 : vector<8x512xf32>
    %c495_i32_54 = arith.constant 495 : i32
    %109 = tpu.dynamic_rotate %73 by %c495_i32_54 dim 1 : vector<8x512xf32>, i32 -> vector<8x512xf32>
    %c8_55 = arith.constant 8 : index
    %c0_56 = arith.constant 0 : index
    %110 = vector.load %arg2[%c8_55, %c0_56] : memref<9x512xf32, #tpu.memory_space<vmem>>, vector<1x512xf32>
    %111 = vector.broadcast %110 : vector<1x512xf32> to vector<8x512xf32>
    %112 = arith.mulf %109, %111 : vector<8x512xf32>
    %113 = tpu.concatenate %104, %108, %112 in 0 : vector<8x512xf32>, vector<8x512xf32>, vector<8x512xf32> -> vector<24x512xf32>
    %c8_57 = arith.constant 8 : index
    %c48 = arith.constant 48 : index
    %114 = vector.load %arg3[%c8_57, %c48] : memref<32x256xf32, #tpu.memory_space<vmem>>, vector<16x24xf32>
    %cst_58 = arith.constant dense<0.000000e+00> : vector<16x512xf32>
    %115 = tpu.matmul %114, %113, %cst_58 {dimension_numbers = #tpu.dot_dimension_numbers<[1], [0], [0], [1], [0, 0, 1, 1], [], []>} : vector<16x24xf32>, vector<24x512xf32>, vector<16x512xf32> -> vector<16x512xf32>
    %116 = arith.addf %100, %115 : vector<16x512xf32>
    %c8_59 = arith.constant 8 : index
    %c72 = arith.constant 72 : index
    %117 = vector.load %arg3[%c8_59, %c72] : memref<32x256xf32, #tpu.memory_space<vmem>>, vector<16x1xf32>
    %118 = vector.broadcast %117 : vector<16x1xf32> to vector<16x512xf32>
    %119 = arith.addf %116, %118 : vector<16x512xf32>
    %cst_60 = arith.constant 0.000000e+00 : f32
    %120 = vector.broadcast %cst_60 : f32 to vector<16x512xf32>
    %121 = arith.maximumf %119, %120 : vector<16x512xf32>
    %c17_i32_61 = arith.constant 17 : i32
    %122 = tpu.dynamic_rotate %121 by %c17_i32_61 dim 1 : vector<16x512xf32>, i32 -> vector<16x512xf32>
    %c0_62 = arith.constant 0 : index
    %c0_63 = arith.constant 0 : index
    %123 = vector.load %arg2[%c0_62, %c0_63] : memref<9x512xf32, #tpu.memory_space<vmem>>, vector<1x512xf32>
    %124 = vector.broadcast %123 : vector<1x512xf32> to vector<16x512xf32>
    %125 = arith.mulf %122, %124 : vector<16x512xf32>
    %c16_i32_64 = arith.constant 16 : i32
    %126 = tpu.dynamic_rotate %121 by %c16_i32_64 dim 1 : vector<16x512xf32>, i32 -> vector<16x512xf32>
    %c1_65 = arith.constant 1 : index
    %c0_66 = arith.constant 0 : index
    %127 = vector.load %arg2[%c1_65, %c0_66] : memref<9x512xf32, #tpu.memory_space<vmem>>, vector<1x512xf32>
    %128 = vector.broadcast %127 : vector<1x512xf32> to vector<16x512xf32>
    %129 = arith.mulf %126, %128 : vector<16x512xf32>
    %c15_i32_67 = arith.constant 15 : i32
    %130 = tpu.dynamic_rotate %121 by %c15_i32_67 dim 1 : vector<16x512xf32>, i32 -> vector<16x512xf32>
    %c2_68 = arith.constant 2 : index
    %c0_69 = arith.constant 0 : index
    %131 = vector.load %arg2[%c2_68, %c0_69] : memref<9x512xf32, #tpu.memory_space<vmem>>, vector<1x512xf32>
    %132 = vector.broadcast %131 : vector<1x512xf32> to vector<16x512xf32>
    %133 = arith.mulf %130, %132 : vector<16x512xf32>
    %134 = tpu.concatenate %125, %129, %133 in 0 : vector<16x512xf32>, vector<16x512xf32>, vector<16x512xf32> -> vector<48x512xf32>
    %c24_70 = arith.constant 24 : index
    %c0_71 = arith.constant 0 : index
    %135 = vector.load %arg3[%c24_70, %c0_71] : memref<32x256xf32, #tpu.memory_space<vmem>>, vector<1x48xf32>
    %cst_72 = arith.constant dense<0.000000e+00> : vector<1x512xf32>
    %136 = tpu.matmul %135, %134, %cst_72 {dimension_numbers = #tpu.dot_dimension_numbers<[1], [0], [0], [1], [0, 0, 1, 1], [], []>} : vector<1x48xf32>, vector<48x512xf32>, vector<1x512xf32> -> vector<1x512xf32>
    %c1_i32_73 = arith.constant 1 : i32
    %137 = tpu.dynamic_rotate %121 by %c1_i32_73 dim 1 : vector<16x512xf32>, i32 -> vector<16x512xf32>
    %c3_74 = arith.constant 3 : index
    %c0_75 = arith.constant 0 : index
    %138 = vector.load %arg2[%c3_74, %c0_75] : memref<9x512xf32, #tpu.memory_space<vmem>>, vector<1x512xf32>
    %139 = vector.broadcast %138 : vector<1x512xf32> to vector<16x512xf32>
    %140 = arith.mulf %137, %139 : vector<16x512xf32>
    %c511_i32_76 = arith.constant 511 : i32
    %141 = tpu.dynamic_rotate %121 by %c511_i32_76 dim 1 : vector<16x512xf32>, i32 -> vector<16x512xf32>
    %c5_77 = arith.constant 5 : index
    %c0_78 = arith.constant 0 : index
    %142 = vector.load %arg2[%c5_77, %c0_78] : memref<9x512xf32, #tpu.memory_space<vmem>>, vector<1x512xf32>
    %143 = vector.broadcast %142 : vector<1x512xf32> to vector<16x512xf32>
    %144 = arith.mulf %141, %143 : vector<16x512xf32>
    %145 = tpu.concatenate %140, %121, %144 in 0 : vector<16x512xf32>, vector<16x512xf32>, vector<16x512xf32> -> vector<48x512xf32>
    %c24_79 = arith.constant 24 : index
    %c48_80 = arith.constant 48 : index
    %146 = vector.load %arg3[%c24_79, %c48_80] : memref<32x256xf32, #tpu.memory_space<vmem>>, vector<1x48xf32>
    %cst_81 = arith.constant dense<0.000000e+00> : vector<1x512xf32>
    %147 = tpu.matmul %146, %145, %cst_81 {dimension_numbers = #tpu.dot_dimension_numbers<[1], [0], [0], [1], [0, 0, 1, 1], [], []>} : vector<1x48xf32>, vector<48x512xf32>, vector<1x512xf32> -> vector<1x512xf32>
    %148 = arith.addf %136, %147 : vector<1x512xf32>
    %c497_i32_82 = arith.constant 497 : i32
    %149 = tpu.dynamic_rotate %121 by %c497_i32_82 dim 1 : vector<16x512xf32>, i32 -> vector<16x512xf32>
    %c6_83 = arith.constant 6 : index
    %c0_84 = arith.constant 0 : index
    %150 = vector.load %arg2[%c6_83, %c0_84] : memref<9x512xf32, #tpu.memory_space<vmem>>, vector<1x512xf32>
    %151 = vector.broadcast %150 : vector<1x512xf32> to vector<16x512xf32>
    %152 = arith.mulf %149, %151 : vector<16x512xf32>
    %c496_i32_85 = arith.constant 496 : i32
    %153 = tpu.dynamic_rotate %121 by %c496_i32_85 dim 1 : vector<16x512xf32>, i32 -> vector<16x512xf32>
    %c7_86 = arith.constant 7 : index
    %c0_87 = arith.constant 0 : index
    %154 = vector.load %arg2[%c7_86, %c0_87] : memref<9x512xf32, #tpu.memory_space<vmem>>, vector<1x512xf32>
    %155 = vector.broadcast %154 : vector<1x512xf32> to vector<16x512xf32>
    %156 = arith.mulf %153, %155 : vector<16x512xf32>
    %c495_i32_88 = arith.constant 495 : i32
    %157 = tpu.dynamic_rotate %121 by %c495_i32_88 dim 1 : vector<16x512xf32>, i32 -> vector<16x512xf32>
    %c8_89 = arith.constant 8 : index
    %c0_90 = arith.constant 0 : index
    %158 = vector.load %arg2[%c8_89, %c0_90] : memref<9x512xf32, #tpu.memory_space<vmem>>, vector<1x512xf32>
    %159 = vector.broadcast %158 : vector<1x512xf32> to vector<16x512xf32>
    %160 = arith.mulf %157, %159 : vector<16x512xf32>
    %161 = tpu.concatenate %152, %156, %160 in 0 : vector<16x512xf32>, vector<16x512xf32>, vector<16x512xf32> -> vector<48x512xf32>
    %c24_91 = arith.constant 24 : index
    %c96 = arith.constant 96 : index
    %162 = vector.load %arg3[%c24_91, %c96] : memref<32x256xf32, #tpu.memory_space<vmem>>, vector<1x48xf32>
    %cst_92 = arith.constant dense<0.000000e+00> : vector<1x512xf32>
    %163 = tpu.matmul %162, %161, %cst_92 {dimension_numbers = #tpu.dot_dimension_numbers<[1], [0], [0], [1], [0, 0, 1, 1], [], []>} : vector<1x48xf32>, vector<48x512xf32>, vector<1x512xf32> -> vector<1x512xf32>
    %164 = arith.addf %148, %163 : vector<1x512xf32>
    %c24_93 = arith.constant 24 : index
    %c144 = arith.constant 144 : index
    %165 = vector.load %arg3[%c24_93, %c144] : memref<32x256xf32, #tpu.memory_space<vmem>>, vector<1x1xf32>
    %166 = vector.broadcast %165 : vector<1x1xf32> to vector<1x512xf32>
    %167 = arith.addf %164, %166 : vector<1x512xf32>
    %c0_94 = arith.constant 0 : index
    %c0_95 = arith.constant 0 : index
    %168 = vector.load %arg4[%c0_94, %c0_95] : memref<1x512xf32, #tpu.memory_space<vmem>>, vector<1x512xf32>
    tpu.vector_store %arg4[%c0_94, %c0_95], %167 {strides = array<i32>} : memref<1x512xf32, #tpu.memory_space<vmem>>, vector<1x512xf32>,
    return
  }
  func.func @transform_0(%arg0: i32) -> (i32, i32) {
    %c0_i32 = arith.constant 0 : i32
    %c0_i32_0 = arith.constant 0 : i32
    return %c0_i32, %arg0 : i32, i32
  }
  func.func @transform_1(%arg0: i32) -> (i32, i32) {
    %c0_i32 = arith.constant 0 : i32
    %c0_i32_0 = arith.constant 0 : i32
    %c0_i32_1 = arith.constant 0 : i32
    return %c0_i32, %c0_i32_0 : i32, i32
  }
  func.func @transform_2(%arg0: i32) -> (i32, i32) {
    %c0_i32 = arith.constant 0 : i32
    %c0_i32_0 = arith.constant 0 : i32
    %c0_i32_1 = arith.constant 0 : i32
    return %c0_i32, %c0_i32_0 : i32, i32
  }
  func.func @transform_3(%arg0: i32) -> (i32, i32) {
    %c0_i32 = arith.constant 0 : i32
    %c0_i32_0 = arith.constant 0 : i32
    return %c0_i32, %arg0 : i32, i32
  }
}

</mosaic_0001>

<bundles_post_ra>
// kernel: forward.1
= control target key start
LH: loop header
LB: loop body
LE: loop exit
PB: predicated region body
PF: predicated region fallthrough
CT: control target
= control target key end

     0   :  { %v1492_v1 = vmov 0   ;;  %s1493_s14 = smov 17   ;;  %s1494_s15 = smov 16   ;;  %v1495_v6 = vmov 2   ;;  %v1496_v7 = vmov 1   ;;  %v1499_v9 = vmov 9   ;;  %s2674_s0 = inlined_call_operand.vmem [shape: f32[1,512], index: 0, kind: input, shape index: {}]   ;;  %s2675_s2 = inlined_call_operand.vmem [shape: f32[32,256], index: 2, kind: input, shape index: {}]   ;;  %s2676_s1 = inlined_call_operand.vmem [shape: f32[9,512], index: 1, kind: input, shape index: {}]   ;;  %s2677_s3 = inlined_call_operand.vmem [shape: f32[1,512], index: 3, kind: output, shape index: {}]  }
   0x1   :  { %v14_v0 = vld [vmem:[%s2674_s0] sm:$0xf]  ;;  %1478 = vset.pattern.permute.xlu0 %v1492_v1  ;;  %1481 = vset.pattern.permute.xlu2 %v1495_v6  ;;  %s1497_s0 = smov 15   ;;  %s1498_s18 = smov 1   ;;  %v1501_v10 = vmov 5   ;;  %v1502_v11 = vmov 3   ;;  %v2678_v18 = vlaneseq }
   0x2   :  { %v1538_v2 = vperm.slane %v14_v0, 2  ;;  %v1540_v3 = vperm.slane %v14_v0, 0  ;;  %v1548_v4 = vperm.slane %v14_v0, 3  ;;  %v1550_v5 = vperm.slane %v14_v0, 1  ;;  %1480 = vset.pattern.permute.xlu1 %v1496_v7  ;;  %v15_v8 = vld [vmem:[%s2675_s2] sm:$0xff]  ;;  %s1500_s19 = smov 127  }
   0x3   :  { %v1503_v12 = vmov 4   ;;  %s1504_s20 = smov 113   ;;  %s1505_s21 = smov 112   ;;  %v1506_v13 = vmov 7   ;;  %v1507_v14 = vmov 6   ;;  %v1508_v16 = vmov 8  }
   0x4   :  { %29 = vrot.lane.b32.xlu1 %v1538_v2, %s1493_s14  ;;  %75 = vrot.lane.b32.xlu2 %v1540_v3, %s1494_s15  ;;  %s1509_s22 = smov 111   ;;  %v1614_v20 = vand.u32 127, %v2678_v18  ;;  %v1412_v33 = vld [vmem:[%s2676_s1 + $0x1] ss:$8 sm:$0xf]  ;;  %s1510_s6 = smov 104  }
   0x5   :  { %25 = vrot.lane.b32.xlu0 %v1540_v3, %s1493_s14  ;;  %v1630_v36 = vperm.slane %v1412_v33, 1  ;;  %v1413_v39 = vld [vmem:[%s2676_s1 + $0x2] ss:$8 sm:$0xf]  ;;  %v1660_v51 = vperm.slane %v1412_v33, 0  ;;  %v1662_v52 = vperm.slane %v1412_v33, 2 }
   0x6   :  { %vm127_vm0 = vcmp.lt.s32.totalorder %v1614_v20, 15  ;;  %vm35_vm1 = vcmp.lt.s32.totalorder %v1614_v20, 17  ;;  %vm83_vm2 = vcmp.lt.s32.totalorder %v1614_v20, 16  ;;  %vm171_vm3 = vcmp.lt.s32.totalorder %v1614_v20, 1  ;;  %s1511_s23 = smov 80  }
   0x7   :  { %2716 = vst [vmem:[#allocation2_spill] sm:$0xff] %v1630_v36  ;;  %v40_v40 = vld [vmem:[%s2676_s1] ss:$8 sm:$0xf]  ;;  %v1646_v43 = vperm.slane %v1413_v39, 0  ;;  %v1664_v53 = vperm.slane %v1413_v39, 3 }
   0x8   :  { %v1650_v45 = vperm.slane %v40_v40, 0  ;;  %v1652_v46 = vperm.slane %v40_v40, 3  ;;  %v1654_v47 = vperm.slane %v40_v40, 1  ;;  %v1656_v48 = vperm.slane %v40_v40, 2 }
   0x9   :  { %v1669_v56 = vperm.slane %v1412_v33, 3  ;;  %v1671_v57 = vperm.slane %v1413_v39, 1  ;;  %v1679_v61 = vperm.slane %v1413_v39, 2  ;;  %v1690_v6 = vld [vmem:[%s2676_s1 + $0x3] ss:$8 sm:$0xf] }
   0xa   :  { %2717 = vst [vmem:[#allocation3_spill] sm:$0xff] %v1650_v45  ;;  %vm227_vm4 = vcmp.lt.s32.totalorder %v1614_v20, 127  ;;  %vm315_vm5 = vcmp.lt.s32.totalorder %v1614_v20, 112  ;;  %vm271_vm6 = vcmp.lt.s32.totalorder %v1614_v20, 113  ;;  %vm359_vm7 = vcmp.lt.s32.totalorder %v1614_v20, 111 }
   0xb   :  { %2718 = vst [vmem:[#allocation4_spill] sm:$0xff] %v1652_v46  ;;  %vm487_vm8 = vcmask 195584   ;;  %vm1024_vm9 = vcmask 392192   ;;  %vm1293_vm10 = vcmask 261120   ;;  %vm1396_vm11 = vcmask 1040384  }
   0xc   :  { %31 = vrot.lane.b32.xlu1 %v1548_v4, %s1493_s14  ;;  %77 = vrot.lane.b32.xlu2 %v1550_v5, %s1494_s15  ;;  %2719 = vst [vmem:[#allocation5_spill] sm:$0xff] %v1654_v47  ;;  %vm1398_vm12 = vcmask 1042434   ;;  %vm1400_vm13 = vcmask 1041408  }
   0xd   :  { %27 = vrot.lane.b32.xlu0 %v1550_v5, %s1493_s14  ;;  %2720 = vst [vmem:[#allocation6_spill] sm:$0xff] %v1656_v48 }
  0x14   :  { %81 = vrot.lane.b32.xlu1 %v1548_v4, %s1494_s15  ;;  %119 = vrot.lane.b32.xlu2 %v1540_v3, %s1497_s0 }
  0x15   :  { %79 = vrot.lane.b32.xlu0 %v1538_v2, %s1494_s15 }
  0x1c   :  { %123 = vrot.lane.b32.xlu1 %v1538_v2, %s1497_s0  ;;  %125 = vrot.lane.b32.xlu2 %v1548_v4, %s1497_s0 }
  0x1d   :  { %121 = vrot.lane.b32.xlu0 %v1550_v5, %s1497_s0 }
  0x24   :  { %163 = vrot.lane.b32.xlu1 %v1540_v3, %s1498_s18  ;;  %165 = vrot.lane.b32.xlu2 %v1550_v5, %s1498_s18 }
  0x25   :  { %56 = vperm.xlu0 %1478, %v15_v8  }
  0x2c   :  { %167 = vrot.lane.b32.xlu1 %v1538_v2, %s1498_s18  ;;  %169 = vrot.lane.b32.xlu2 %v1548_v4, %s1498_s18 }
  0x2d   :  { %1479 = vset.pattern.permute.xlu0 %v1499_v9 }
  0x2e   :  { %68 = vperm.xlu0 %1479, %v15_v8  }
  0x34   :  { %104 = vperm.xlu1 %1480, %v15_v8   ;;  %148 = vperm.xlu2 %1481, %v15_v8  }
  0x36   :  { %223 = vrot.lane.b32.xlu0 %v1538_v2, %s1500_s19 }
  0x37   :  { %1484 = vset.pattern.permute.xlu0 %v1501_v10 }
  0x3c   :  { %219 = vrot.lane.b32.xlu1 %v1540_v3, %s1500_s19  ;;  %221 = vrot.lane.b32.xlu2 %v1550_v5, %s1500_s19 }
  0x3d   :  { %1482 = vset.pattern.permute.xlu2 %v1502_v11  ;;  %1483 = vset.pattern.permute.xlu1 %v1503_v12  ;;  %v1698_v11 = vperm.slane %v1690_v6, 2 }
  0x3e   :  { %263 = vrot.lane.b32.xlu0 %v1540_v3, %s1504_s20 }
  0x44   :  { %225 = vrot.lane.b32.xlu1 %v1548_v4, %s1500_s19  ;;  %192 = vperm.xlu2 %1482, %v15_v8  }
  0x46   :  { %269 = vrot.lane.b32.xlu0 %v1548_v4, %s1504_s20 }
  0x4c   :  { %265 = vrot.lane.b32.xlu1 %v1550_v5, %s1504_s20  ;;  %267 = vrot.lane.b32.xlu2 %v1538_v2, %s1504_s20 }
  0x4d   :  { %1487 = vset.pattern.permute.xlu2 %v1508_v16 }
  0x4e   :  { %309 = vrot.lane.b32.xlu0 %v1550_v5, %s1505_s21 }
  0x54   :  { %208 = vperm.xlu1 %1483, %v15_v8   ;;  %307 = vrot.lane.b32.xlu2 %v1540_v3, %s1505_s21 }
  0x56   :  { %248 = vperm.xlu0 %1484, %v15_v8  }
  0x5c   :  { %311 = vrot.lane.b32.xlu1 %v1538_v2, %s1505_s21  ;;  %313 = vrot.lane.b32.xlu2 %v1548_v4, %s1505_s21 }
  0x5d   :  { %1486 = vset.pattern.permute.xlu1 %v1506_v13 }
  0x5e   :  { %1485 = vset.pattern.permute.xlu0 %v1507_v14  ;;  %v76_v15 = vpop.permute.xlu2 %75 }
  0x5f   :  { %292 = vperm.xlu0 %1485, %v15_v8  }
  0x64   :  { %351 = vrot.lane.b32.xlu1 %v1540_v3, %s1509_s22  ;;  %353 = vrot.lane.b32.xlu2 %v1550_v5, %s1509_s22 }
  0x66   :  { %v78_v17 = vpop.permute.xlu2 %77 }
  0x67   :  { %v86_v37 = vsel %vm83_vm2, %v76_v15, %v78_v17 }
  0x68   :  { %v1644_v41 = vmul.f32 %v1630_v36, %v86_v37 }
  0x6a   :  { %v108_v54 = vperm.slane %v1644_v41, 0 }
  0x6c   :  { %355 = vrot.lane.b32.xlu1 %v1538_v2, %s1509_s22  ;;  %357 = vrot.lane.b32.xlu2 %v1548_v4, %s1509_s22 }
  0x6e   :  { %v120_v19 = vpop.permute.xlu2 %119 }
  0x74   :  { %336 = vperm.xlu1 %1486, %v15_v8   ;;  %380 = vperm.xlu2 %1487, %v15_v8  }
  0x76   :  { %v30_v21 = vpop.permute.xlu1 %29  ;;  %v126_v22 = vpop.permute.xlu2 %125 }
  0x77   :  { %v131_v23 = vsel %vm127_vm0, %v126_v22, %v120_v19  ;;  %v26_v24 = vpop.permute.xlu0 %25 }
  0x78   :  { %v143_v62 = vmul.f32 %v1646_v43, %v131_v23 }
  0x7a   :  { %v151_v23 = vperm.slane %v143_v62, 0 }
  0x7e   :  { %v32_v25 = vpop.permute.xlu1 %31  ;;  %v166_v26 = vpop.permute.xlu2 %165 }
  0x7f   :  { %v28_v27 = vpop.permute.xlu0 %27  ;;  %v39_v50 = vsel %vm35_vm1, %v32_v25, %v26_v24  ;;  %v36_v55 = vsel %vm35_vm1, %v30_v21, %v32_v25  ;;  %v1716_v25 = vperm.slane %v1690_v6, 1 }
  0x80   :  { %v38_v28 = vsel %vm35_vm1, %v26_v24, %v28_v27  ;;  %v37_v58 = vsel %vm35_vm1, %v28_v27, %v30_v21  ;;  %v50_v63 = vmul.f32 %v1650_v45, %v39_v50  ;;  %v53_v7 = vmul.f32 %v1652_v46, %v36_v55 }
  0x81   :  { %v51_v8 = vmul.f32 %v1654_v47, %v38_v28  ;;  %v52_v12 = vmul.f32 %v1656_v48, %v37_v58  ;;  %v1710_v21 = vperm.slane %v1690_v6, 0 }
  0x82   :  { %v59_v24 = vperm.slane %v50_v63, 0  ;;  %v62_v28 = vperm.slane %v53_v7, 0 }
  0x83   :  { %v61_v33 = vperm.slane %v52_v12, 0 }
  0x86   :  { %v82_v29 = vpop.permute.xlu1 %81  ;;  %v1622_v31 = vpop.permute.xlu2 %169 }
  0x87   :  { %v80_v30 = vpop.permute.xlu0 %79  ;;  %v87_v59 = vsel %vm83_vm2, %v82_v29, %v76_v15 }
  0x88   :  { %v85_v60 = vsel %vm83_vm2, %v78_v17, %v80_v30  ;;  %v99_v13 = vmul.f32 %v1660_v51, %v87_v59  ;;  %v84_v14 = vsel %vm83_vm2, %v80_v30, %v82_v29  ;;  %v60_v29 = vperm.slane %v51_v8, 0 }
  0x89   :  { %v101_v15 = vmul.f32 %v1662_v52, %v85_v60  ;;  %v102_v30 = vmul.f32 %v1669_v56, %v84_v14 }
  0x8b   :  { %v110_v60 = vperm.slane %v102_v30, 0 }
  0x8e   :  { %v124_v32 = vpop.permute.xlu1 %123  ;;  %v1634_v38 = vpop.permute.xlu2 %148 }
  0x8f   :  { %v128_v34 = vsel %vm127_vm0, %v124_v32, %v126_v22  ;;  %v122_v35 = vpop.permute.xlu0 %121  ;;  %v155_v62 = vmul.f32 %v151_v23, %v1634_v38 }
  0x90   :  { %v129_v0 = vsel %vm127_vm0, %v122_v35, %v124_v32  ;;  %v130_v1 = vsel %vm127_vm0, %v120_v19, %v122_v35  ;;  %v146_v9 = vmul.f32 %v1664_v53, %v128_v34  ;;  %v107_v34 = vperm.slane %v99_v13, 0 }
  0x91   :  { %v144_v17 = vmul.f32 %v1671_v57, %v130_v1  ;;  %v145_v19 = vmul.f32 %v1679_v61, %v129_v0  ;;  %v109_v35 = vperm.slane %v101_v15, 0 }
  0x92   :  { %v154_v32 = vperm.slane %v146_v9, 0 }
  0x93   :  { %v152_v39 = vperm.slane %v144_v17, 0  ;;  %v153_v40 = vperm.slane %v145_v19, 0 }
  0x94   :  { %v158_v63 = vmul.f32 %v154_v32, %v1634_v38 }
  0x95   :  { %v156_v19 = vmul.f32 %v152_v39, %v1634_v38 }
  0x96   :  { %v164_v42 = vpop.permute.xlu1 %163  ;;  %v1695_v10 = vpop.permute.xlu2 %221 }
  0x97   :  { %v174_v44 = vsel %vm171_vm3, %v164_v42, %v166_v26  ;;  %v57_v49 = vpop.permute.xlu0 %56  ;;  %v175_v27 = vsel %vm171_vm3, %v1622_v31, %v164_v42 }
  0x98   :  { %v187_v41 = vmul.f32 %v1710_v21, %v175_v27  ;;  %v63_v50 = vmul.f32 %v59_v24, %v57_v49  ;;  %v188_v55 = vmul.f32 %v1716_v25, %v174_v44  ;;  %v64_v58 = vmul.f32 %v60_v29, %v57_v49 }
  0x99   :  { %v65_v42 = vmul.f32 %v61_v33, %v57_v49  ;;  %v66_v59 = vmul.f32 %v62_v28, %v57_v49  ;;  %v157_v49 = vmul.f32 %v153_v40, %v1634_v38 }
  0x9a   :  { %v196_v23 = vperm.slane %v188_v55, 0 }
  0x9e   :  { %v1705_v16 = vpop.permute.xlu1 %167  ;;  %v1727_v13 = vpop.permute.xlu2 %192 }
  0x9f   :  { %v173_v22 = vsel %vm171_vm3, %v166_v26, %v1705_v16  ;;  %v200_v32 = vmul.f32 %v196_v23, %v1727_v13 }
  0xa0   :  { %v189_v37 = vmul.f32 %v1698_v11, %v173_v22  ;;  %v69_v26 = vpop.permute.xlu0 %68  ;;  %v195_v22 = vperm.slane %v187_v41, 0 }
  0xa1   :  { %v71_v0 = vadd.f32 %v69_v26, %v63_v50  ;;  %v72_v7 = vadd.f32 %v69_v26, %v64_v58  ;;  %v73_v8 = vadd.f32 %v69_v26, %v65_v42  ;;  %v74_v9 = vadd.f32 %v69_v26, %v66_v59 }
  0xa2   :  { %v197_v1 = vperm.slane %v189_v37, 0  ;;  %v199_v30 = vmul.f32 %v195_v22, %v1727_v13 }
  0xa4   :  { %v201_v33 = vmul.f32 %v197_v1, %v1727_v13  ;;  %v1754_v1 = vperm.slane %v1690_v6, 3 }
  0xa6   :  { %v105_v12 = vpop.permute.xlu1 %104  ;;  %v268_v50 = vpop.permute.xlu2 %267 }
  0xa7   :  { %v111_v14 = vmul.f32 %v107_v34, %v105_v12  ;;  %v112_v15 = vmul.f32 %v108_v54, %v105_v12  ;;  %v113_v17 = vmul.f32 %v109_v35, %v105_v12  ;;  %v114_v44 = vmul.f32 %v110_v60, %v105_v12 }
  0xa8   :  { %v224_v26 = vpop.permute.xlu0 %223 }
  0xa9   :  { %v115_v24 = vadd.f32 %v111_v14, %v71_v0  ;;  %v116_v27 = vadd.f32 %v112_v15, %v72_v7  ;;  %v117_v28 = vadd.f32 %v113_v17, %v73_v8  ;;  %v118_v29 = vadd.f32 %v114_v44, %v74_v9  ;;  %v1415_v9 = vld [vmem:[%s2676_s1 + $0x5] ss:$8 sm:$0xf]  ;;  %v1417_v44 = vld [vmem:[%s2676_s1 + $0x7] ss:$8 sm:$0xf] }
  0xaa   :  { %v172_v7 = vsel %vm171_vm3, %v1705_v16, %v1622_v31  ;;  %v1769_v15 = vperm.slane %v1415_v9, 1  ;;  %v1771_v6 = vperm.slane %v1415_v9, 0  ;;  %v1773_v17 = vperm.slane %v1415_v9, 2  ;;  %v1416_v16 = vld [vmem:[%s2676_s1 + $0x6] ss:$8 sm:$0xf] }
  0xab   :  { %v159_v34 = vadd.f32 %v155_v62, %v115_v24  ;;  %v160_v54 = vadd.f32 %v156_v19, %v116_v27  ;;  %v161_v35 = vadd.f32 %v157_v49, %v117_v28  ;;  %v162_v37 = vadd.f32 %v158_v63, %v118_v29  ;;  %v1749_v63 = vld [vmem:[%s2675_s2 + $0x10] sm:$0xff] }
  0xac   :  { %483 = vrot.lane.b32.xlu2 %v1749_v63, %s1510_s6  ;;  %v190_v12 = vmul.f32 %v1754_v1, %v172_v7  ;;  %v229_v31 = vsel %vm227_vm4, %v1695_v10, %v224_v26  ;;  %v1789_v23 = vperm.slane %v1415_v9, 3  ;;  %v1795_v27 = vperm.slane %v1416_v16, 2 }
  0xad   :  { %v1734_v39 = vadd.f32 %v199_v30, %v159_v34  ;;  %v1736_v38 = vadd.f32 %v200_v32, %v160_v54  ;;  %v1738_v40 = vadd.f32 %v201_v33, %v161_v35  ;;  %v1797_v28 = vperm.slane %v1416_v16, 3 }
  0xae   :  { %v220_v41 = vpop.permute.xlu1 %219  ;;  %v1740_v42 = vpop.permute.xlu2 %307  ;;  %v198_v49 = vperm.slane %v190_v12, 0  ;;  %2721 = vst [vmem:[#allocation7_spill] sm:$0xff] %v1795_v27  ;;  %v1800_v29 = vmul.f32 %v1769_v15, %v229_v31  ;;  %v1806_v32 = vperm.slane %v1417_v44, 3  ;;  %v1821_v7 = vperm.slane %v1416_v16, 1 }
  0xaf   :  { %v230_v22 = vsel %vm227_vm4, %v220_v41, %v1695_v10  ;;  %2722 = vst [vmem:[#allocation8_spill] sm:$0xff] %v1797_v28  ;;  %v1804_v10 = vperm.slane %v1416_v16, 0  ;;  %v1823_v9 = vperm.slane %v1417_v44, 0  ;;  %v1418_v12 = vld [vmem:[%s2676_s1 + $0x20] ss:$8 sm:$0xf] }
  0xb0   :  { %v264_v58 = vpop.permute.xlu0 %263  ;;  %2724 = vst [vmem:[#allocation10_spill] sm:$0xff] %v1806_v32  ;;  %v243_v33 = vmul.f32 %v1771_v6, %v230_v22  ;;  %v1831_v18 = vperm.slane %v1417_v44, 1  ;;  %v1833_v47 = vperm.slane %v1417_v44, 2  ;;  %v252_v45 = vperm.slane %v1800_v29, 0 }
  0xb1   :  { %2723 = vst [vmem:[#allocation9_spill] sm:$0xff] %v1804_v10 }
  0xb2   :  { %2725 = vst [vmem:[#allocation11_spill] sm:$0xff] %v1821_v7  ;;  %v251_v46 = vperm.slane %v243_v33, 0 }
  0xb3   :  { %2726 = vst [vmem:[#allocation12_spill] sm:$0xff] %v1823_v9 }
  0xb4   :  { %2727 = vst [vmem:[#allocation13_spill] sm:$0xff] %v1831_v18 }
  0xb5   :  { %2728 = vst [vmem:[#allocation14_spill] sm:$0xff] %v1833_v47 }
  0xb6   :  { %v226_v55 = vpop.permute.xlu1 %225  ;;  %v1744_v62 = vpop.permute.xlu2 %313 }
  0xb7   :  { %v228_v24 = vsel %vm227_vm4, %v224_v26, %v226_v55  ;;  %v231_v30 = vsel %vm227_vm4, %v226_v55, %v220_v41  ;;  %v319_v35 = vsel %vm315_vm5, %v1744_v62, %v1740_v42  ;;  %v202_v41 = vmul.f32 %v198_v49, %v1727_v13 }
  0xb8   :  { %v270_v60 = vpop.permute.xlu0 %269  ;;  %v245_v55 = vmul.f32 %v1773_v17, %v228_v24  ;;  %v246_v31 = vmul.f32 %v1789_v23, %v231_v30  ;;  %v1838_v49 = vmul.f32 %v1806_v32, %v319_v35  ;;  %v1842_v30 = vperm.slane %v1418_v12, 0 }
  0xb9   :  { %v272_v34 = vsel %vm271_vm6, %v268_v50, %v270_v60  ;;  %v275_v54 = vsel %vm271_vm6, %v270_v60, %v264_v58  ;;  %v206_v24 = vadd.f32 %v202_v41, %v162_v37 }
  0xba   :  { %v289_v13 = vmul.f32 %v1795_v27, %v272_v34  ;;  %v290_v16 = vmul.f32 %v1797_v28, %v275_v54  ;;  %2729 = vst [vmem:[#allocation15_spill] sm:$0xff] %v1842_v30  ;;  %v1847_v34 = vperm.slane %v1418_v12, 3  ;;  %v254_v54 = vperm.slane %v246_v31, 0 }
  0xbc   :  { %2730 = vst [vmem:[#allocation16_spill] sm:$0xff] %v1847_v34  ;;  %v297_v41 = vperm.slane %v289_v13, 0 }
  0xbe   :  { %v266_v59 = vpop.permute.xlu1 %265  ;;  %v1784_v19 = vpop.permute.xlu2 %353 }
  0xbf   :  { %v274_v22 = vsel %vm271_vm6, %v264_v58, %v266_v59  ;;  %v253_v58 = vperm.slane %v245_v55, 0  ;;  %v273_v44 = vsel %vm271_vm6, %v266_v59, %v268_v50  ;;  %v298_v55 = vperm.slane %v290_v16, 0 }
  0xc0   :  { %v1760_v8 = vpop.permute.xlu0 %309  ;;  %v287_v36 = vmul.f32 %v1804_v10, %v274_v22  ;;  %v342_v50 = vperm.slane %v1838_v49, 0  ;;  %v1858_v59 = vperm.slane %v1418_v12, 2  ;;  %v288_v31 = vmul.f32 %v1821_v7, %v273_v44 }
  0xc1   :  { %v318_v37 = vsel %vm315_vm5, %v1740_v42, %v1760_v8 }
  0xc2   :  { %2731 = vst [vmem:[#allocation17_spill] sm:$0xff] %v1858_v59  ;;  %v331_v13 = vmul.f32 %v1823_v9, %v318_v37 }
  0xc4   :  { %v339_v27 = vperm.slane %v331_v13, 0 }
  0xc6   :  { %v1742_v0 = vpop.permute.xlu1 %208  ;;  %v358_v35 = vpop.permute.xlu2 %357 }
  0xc7   :  { %v211_v29 = vmul.f32 %v1742_v0, %v1540_v3  ;;  %v213_v33 = vmul.f32 %v1742_v0, %v1538_v2  ;;  %v214_v22 = vmul.f32 %v1742_v0, %v1548_v4  ;;  %v295_v2 = vperm.slane %v287_v36, 0 }
  0xc8   :  { %v1817_v26 = vpop.permute.xlu0 %248  ;;  %v212_v16 = vmul.f32 %v1742_v0, %v1550_v5 }
  0xc9   :  { %v215_v4 = vadd.f32 %v211_v29, %v1734_v39  ;;  %v217_v7 = vadd.f32 %v213_v33, %v1738_v40  ;;  %v255_v5 = vmul.f32 %v251_v46, %v1817_v26  ;;  %v257_v0 = vmul.f32 %v253_v58, %v1817_v26 }
  0xca   :  { %v218_v39 = vadd.f32 %v214_v22, %v206_v24  ;;  %v258_v40 = vmul.f32 %v254_v54, %v1817_v26  ;;  %v296_v46 = vperm.slane %v288_v31, 0  ;;  %v216_v58 = vadd.f32 %v212_v16, %v1736_v38 }
  0xcb   :  { %v259_v9 = vadd.f32 %v255_v5, %v215_v4 }
  0xcc   :  { %v262_v54 = vadd.f32 %v258_v40, %v218_v39 }
  0xce   :  { %v1766_v14 = vpop.permute.xlu1 %311 }
  0xcf   :  { %v316_v49 = vsel %vm315_vm5, %v1766_v14, %v1744_v62  ;;  %v317_v36 = vsel %vm315_vm5, %v1760_v8, %v1766_v14 }
  0xd0   :  { %v333_v29 = vmul.f32 %v1833_v47, %v316_v49  ;;  %v332_v8 = vmul.f32 %v1831_v18, %v317_v36  ;;  %v381_v49 = vpop.permute.xlu2 %380 }
  0xd2   :  { %v341_v32 = vperm.slane %v333_v29, 0 }
  0xd6   :  { %v352_v60 = vpop.permute.xlu1 %351 }
  0xd7   :  { %v362_v42 = vsel %vm359_vm7, %v352_v60, %v1784_v19  ;;  %v363_v3 = vsel %vm359_vm7, %v358_v35, %v352_v60  ;;  %v293_v60 = vpop.permute.xlu0 %292 }
  0xd8   :  { %v375_v62 = vmul.f32 %v1842_v30, %v362_v42  ;;  %v378_v10 = vmul.f32 %v1847_v34, %v363_v3  ;;  %v299_v14 = vmul.f32 %v295_v2, %v293_v60  ;;  %v301_v28 = vmul.f32 %v297_v41, %v293_v60 }
  0xd9   :  { %v302_v42 = vmul.f32 %v298_v55, %v293_v60  ;;  %v261_v3 = vadd.f32 %v257_v0, %v217_v7  ;;  %v340_v41 = vperm.slane %v332_v8, 0  ;;  %v300_v4 = vmul.f32 %v296_v46, %v293_v60 }
  0xda   :  { %v383_v24 = vperm.slane %v375_v62, 0  ;;  %v386_v22 = vperm.slane %v378_v10, 0  ;;  %v303_v31 = vadd.f32 %v299_v14, %v259_v9 }
  0xdb   :  { %v305_v13 = vadd.f32 %v301_v28, %v261_v3  ;;  %v306_v38 = vadd.f32 %v302_v42, %v262_v54 }
  0xdc   :  { %v387_v10 = vmul.f32 %v383_v24, %v381_v49  ;;  %v390_v5 = vmul.f32 %v386_v22, %v381_v49 }
  0xde   :  { %v356_v44 = vpop.permute.xlu1 %355 }
  0xdf   :  { %v360_v37 = vsel %vm359_vm7, %v356_v44, %v358_v35  ;;  %v1891_v35 = vperm.slane %v1418_v12, 1  ;;  %v361_v36 = vsel %vm359_vm7, %v1784_v19, %v356_v44  ;;  %v256_v12 = vmul.f32 %v252_v45, %v1817_v26 }
  0xe0   :  { %v377_v33 = vmul.f32 %v1858_v59, %v360_v37 }
  0xe1   :  { %v376_v0 = vmul.f32 %v1891_v35, %v361_v36  ;;  %v260_v44 = vadd.f32 %v256_v12, %v216_v58  ;;  %v1924_v58 = vld [vmem:[%s2675_s2 + $0x20] sm:$0xff] }
  0xe2   :  { %v385_v2 = vperm.slane %v377_v33, 0 }
  0xe3   :  { %v304_v28 = vadd.f32 %v300_v4, %v260_v44  ;;  %v384_v33 = vperm.slane %v376_v0, 0 }
  0xe4   :  { %v389_v62 = vmul.f32 %v385_v2, %v381_v49 }
  0xe5   :  { %v388_v60 = vmul.f32 %v384_v33, %v381_v49 }
  0xe6   :  { %v337_v37 = vpop.permute.xlu1 %336 }
  0xe7   :  { %v343_v55 = vmul.f32 %v339_v27, %v337_v37  ;;  %v345_v16 = vmul.f32 %v341_v32, %v337_v37  ;;  %v346_v7 = vmul.f32 %v342_v50, %v337_v37  ;;  %v344_v29 = vmul.f32 %v340_v41, %v337_v37 }
  0xe9   :  { %v347_v39 = vadd.f32 %v343_v55, %v303_v31  ;;  %v349_v40 = vadd.f32 %v345_v16, %v305_v13  ;;  %v350_v19 = vadd.f32 %v346_v7, %v306_v38  ;;  %v348_v50 = vadd.f32 %v344_v29, %v304_v28 }
  0xeb   :  { %v391_v45 = vadd.f32 %v387_v10, %v347_v39  ;;  %v393_v26 = vadd.f32 %v389_v62, %v349_v40  ;;  %v394_v9 = vadd.f32 %v390_v5, %v350_v19  ;;  %v392_v14 = vadd.f32 %v388_v60, %v348_v50 }
  0xed   :  { %v1899_v8 = vmax.f32 %v391_v45, 0.0  ;;  %v397_v27 = vmax.f32 %v393_v26, 0.0  ;;  %v398_v32 = vmax.f32 %v394_v9, 0.0  ;;  %v1905_v46 = vmax.f32 %v392_v14, 0.0 }
  0xef   :  { %471 = vrot.lane.b32.xlu0 %v398_v32, %s1500_s19  ;;  %469 = vrot.lane.b32.xlu2 %v397_v27, %s1500_s19 }
  0xf0   :  { %465 = vrot.lane.b32.xlu1 %v1899_v8, %s1500_s19 }
  0xf7   :  { %455 = vrot.lane.b32.xlu0 %v398_v32, %s1498_s18  ;;  %453 = vrot.lane.b32.xlu2 %v397_v27, %s1498_s18 }
  0xf8   :  { %451 = vrot.lane.b32.xlu1 %v1905_v46, %s1498_s18 }
  0xff   :  { %435 = vrot.lane.b32.xlu2 %v397_v27, %s1497_s0  ;;  %449 = vrot.lane.b32.xlu0 %v1899_v8, %s1498_s18 }
 0x100   :  { %467 = vrot.lane.b32.xlu1 %v1905_v46, %s1500_s19 }
 0x106   :  { %v484_v42 = vpop.permute.xlu2 %483 }
 0x107   :  { %417 = vrot.lane.b32.xlu2 %v1905_v46, %s1494_s15  ;;  %437 = vrot.lane.b32.xlu0 %v398_v32, %s1497_s0 }
 0x108   :  { %433 = vrot.lane.b32.xlu1 %v1905_v46, %s1497_s0 }
 0x10f   :  { %401 = vrot.lane.b32.xlu2 %v1905_v46, %s1493_s14  ;;  %419 = vrot.lane.b32.xlu0 %v397_v27, %s1494_s15 }
 0x110   :  { %485 = vrot.lane.b32.xlu1 %v1924_v58, %s1510_s6 }
 0x117   :  { %431 = vrot.lane.b32.xlu2 %v1899_v8, %s1497_s0  ;;  %403 = vrot.lane.b32.xlu0 %v397_v27, %s1493_s14 }
 0x118   :  { %421 = vrot.lane.b32.xlu1 %v398_v32, %s1494_s15 }
 0x11f   :  { %712 = vrot.lane.b32.xlu2 %v1899_v8, %s1509_s22  ;;  %415 = vrot.lane.b32.xlu0 %v1899_v8, %s1494_s15 }
 0x120   :  { %405 = vrot.lane.b32.xlu1 %v398_v32, %s1493_s14 }
 0x127   :  { %696 = vrot.lane.b32.xlu2 %v1899_v8, %s1505_s21  ;;  %716 = vrot.lane.b32.xlu0 %v397_v27, %s1509_s22 }
 0x128   :  { %399 = vrot.lane.b32.xlu1 %v1899_v8, %s1493_s14 }
 0x12f   :  { %680 = vrot.lane.b32.xlu2 %v1899_v8, %s1504_s20  ;;  %700 = vrot.lane.b32.xlu0 %v397_v27, %s1505_s21 }
 0x130   :  { %718 = vrot.lane.b32.xlu1 %v398_v32, %s1509_s22 }
 0x137   :  { %714 = vrot.lane.b32.xlu2 %v1905_v46, %s1509_s22  ;;  %684 = vrot.lane.b32.xlu0 %v397_v27, %s1504_s20 }
 0x138   :  { %702 = vrot.lane.b32.xlu1 %v398_v32, %s1505_s21 }
 0x13f   :  { %682 = vrot.lane.b32.xlu2 %v1905_v46, %s1504_s20  ;;  %698 = vrot.lane.b32.xlu0 %v1905_v46, %s1505_s21 }
 0x140   :  { %686 = vrot.lane.b32.xlu1 %v398_v32, %s1504_s20 }
 0x147   :  { %730 = vrot.lane.b32.xlu0 %v1924_v58, %s1511_s23 }
 0x148   :  { %728 = vrot.lane.b32.xlu1 %v1749_v63, %s1511_s23 }
 0x149   :  { %v470_v3 = vpop.permute.xlu2 %469 }
 0x151   :  { %v454_v24 = vpop.permute.xlu2 %453 }
 0x159   :  { %v436_v22 = vpop.permute.xlu2 %435 }
 0x161   :  { %v472_v54 = vpop.permute.xlu0 %471  ;;  %v1962_v49 = vpop.permute.xlu2 %417 }
 0x162   :  { %v466_v36 = vpop.permute.xlu1 %465  ;;  %v473_v2 = vsel %vm227_vm4, %v470_v3, %v472_v54 }
 0x163   :  { %v479_v12 = vmul.f32 %v473_v2, %v1773_v17  ;;  %v476_v41 = vsel %vm227_vm4, %v472_v54, %v466_v36 }
 0x164   :  { %v480_v31 = vmul.f32 %v476_v41, %v1789_v23 }
 0x165   :  { %551 = vmatpush.msra.mxu2 %v479_v12 }
 0x166   :  { %574 = vmatpush.msra.mxu3 %v480_v31 }
 0x167   :  { %552 = vmatpush.msra.mxu2 %v397_v27 }
 0x168   :  { %575 = vmatpush.msra.mxu3 %v398_v32 }
 0x169   :  { %v456_v13 = vpop.permute.xlu0 %455  ;;  %v1970_v37 = vpop.permute.xlu2 %401 }
 0x16a   :  { %v457_v38 = vsel %vm171_vm3, %v454_v24, %v456_v13  ;;  %v452_v55 = vpop.permute.xlu1 %451 }
 0x16b   :  { %v458_v16 = vsel %vm171_vm3, %v452_v55, %v454_v24  ;;  %v464_v7 = vmul.f32 %v457_v38, %v1754_v1 }
 0x16c   :  { %v463_v4 = vmul.f32 %v458_v16, %v1698_v11 }
 0x16d   :  { %576 = vmatpush.msra.mxu3 %v464_v7 }
 0x16e   :  { %553 = vmatpush.msra.mxu2 %v463_v4  ;;  %1425 = vmatmul.msk.f32.vlgmr.msra.gmra.mxu3 %vm487_vm8, %v484_v42 }
 0x16f   :  { %1423 = vmatmul.msk.f32.vlgmr.msra.gmra.mxu2 %vm487_vm8, %v484_v42 }
 0x171   :  { %v432_v10 = vpop.permute.xlu2 %431  ;;  %v450_v5 = vpop.permute.xlu0 %449 }
 0x172   :  { %v468_v0 = vpop.permute.xlu1 %467  ;;  %v459_v44 = vsel %vm171_vm3, %v450_v5, %v452_v55  ;;  %v460_v29 = vsel %vm171_vm3, %v456_v13, %v450_v5 }
 0x173   :  { %v475_v62 = vsel %vm227_vm4, %v466_v36, %v468_v0  ;;  %v474_v39 = vsel %vm227_vm4, %v468_v0, %v470_v3  ;;  %v461_v45 = vmul.f32 %v460_v29, %v1710_v21  ;;  %v462_v26 = vmul.f32 %v459_v44, %v1716_v25 }
 0x174   :  { %v477_v40 = vmul.f32 %v475_v62, %v1771_v6  ;;  %v478_v19 = vmul.f32 %v474_v39, %v1769_v15  ;;  %v2732_v62 = vld [vmem:[#allocation2_spill] sm:$0xff] }
 0x176   :  { %505 = vmatpush.msra.mxu0 %v477_v40  ;;  %528 = vmatpush.msra.mxu1 %v478_v19  ;;  %v2733_v40 = vld [vmem:[#allocation4_spill] sm:$0xff] }
 0x178   :  { %506 = vmatpush.msra.mxu0 %v1899_v8  ;;  %529 = vmatpush.msra.mxu1 %v1905_v46 }
 0x179   :  { %v438_v9 = vpop.permute.xlu0 %437  ;;  %v1994_v28 = vpop.permute.xlu2 %712 }
 0x17a   :  { %v439_v33 = vsel %vm127_vm0, %v436_v22, %v438_v9  ;;  %v442_v27 = vsel %vm127_vm0, %v438_v9, %v432_v10  ;;  %507 = vmatpush.msra.mxu0 %v461_v45  ;;  %530 = vmatpush.msra.mxu1 %v462_v26  ;;  %v434_v32 = vpop.permute.xlu1 %433 }
 0x17b   :  { %v440_v8 = vsel %vm127_vm0, %v434_v32, %v436_v22  ;;  %v441_v50 = vsel %vm127_vm0, %v432_v10, %v434_v32  ;;  %1419 = vmatmul.msk.f32.vlgmr.msra.gmra.mxu0 %vm487_vm8, %v484_v42  ;;  %1421 = vmatmul.msk.f32.vlgmr.msra.gmra.mxu1 %vm487_vm8, %v484_v42  ;;  %v443_v60 = vmul.f32 %v442_v27, %v1646_v43  ;;  %v2734_v27 = vld [vmem:[#allocation3_spill] sm:$0xff] }
 0x17c   :  { %v444_v14 = vmul.f32 %v441_v50, %v1671_v57  ;;  %v445_v46 = vmul.f32 %v440_v8, %v1679_v61  ;;  %v446_v3 = vmul.f32 %v439_v33, %v1664_v53  ;;  %v2735_v8 = vld [vmem:[#allocation5_spill] sm:$0xff] }
 0x17d   :  { %601 = vmatpush.msrb.mxu0 %v443_v60 }
 0x17e   :  { %624 = vmatpush.msrb.mxu1 %v444_v14  ;;  %647 = vmatpush.msrb.mxu2 %v445_v46 }
 0x17f   :  { %670 = vmatpush.msrb.mxu3 %v446_v3 }
 0x181   :  { %v420_v24 = vpop.permute.xlu0 %419  ;;  %v2016_v36 = vpop.permute.xlu2 %696 }
 0x182   :  { %v424_v22 = vsel %vm83_vm2, %v1962_v49, %v420_v24  ;;  %v486_v54 = vpop.permute.xlu1 %485 }
 0x183   :  { %v429_v42 = vmul.f32 %v424_v22, %v1662_v52  ;;  %1424 = vmatmul.msk.f32.gmra.mxu2 %vm487_vm8, %v486_v54  ;;  %1420 = vmatmul.msk.f32.gmra.mxu0 %vm487_vm8, %v486_v54 }
 0x184   :  { %1422 = vmatmul.msk.f32.gmra.mxu1 %vm487_vm8, %v486_v54  ;;  %1426 = vmatmul.msk.f32.gmra.mxu3 %vm487_vm8, %v486_v54 }
 0x185   :  { %648 = vmatpush.msrb.mxu2 %v429_v42  ;;  %v1512_v42 = vmov 72  }
 0x186   :  { %1488 = vset.pattern.permute.xlu1 %v1512_v42  ;;  %1489 = vset.pattern.permute.xlu2 %v1512_v42 }
 0x187   :  { %841 = vperm.xlu1 %1488, %v1924_v58   ;;  %837 = vperm.xlu2 %1489, %v1749_v63  }
 0x189   :  { %v404_v2 = vpop.permute.xlu0 %403  ;;  %v2027_v55 = vpop.permute.xlu2 %680 }
 0x18a   :  { %v408_v12 = vsel %vm35_vm1, %v1970_v37, %v404_v2  ;;  %v422_v41 = vpop.permute.xlu1 %421 }
 0x18b   :  { %v423_v31 = vsel %vm83_vm2, %v420_v24, %v422_v41  ;;  %v413_v13 = vmul.f32 %v408_v12, %v1656_v48 }
 0x18c   :  { %v430_v38 = vmul.f32 %v423_v31, %v1669_v56 }
 0x18d   :  { %649 = vmatpush.msrb.mxu2 %v413_v13  ;;  %v2736_v13 = vld [vmem:[#allocation10_spill] sm:$0xff] }
 0x18e   :  { %671 = vmatpush.msrb.mxu3 %v430_v38  ;;  %1431 = vmatmul.msk.f32.vlgmr.msrb.gmra.mxu2 %vm487_vm8, %v1749_v63 }
 0x191   :  { %v416_v16 = vpop.permute.xlu0 %415 }
 0x192   :  { %v425_v7 = vsel %vm83_vm2, %v416_v16, %v1962_v49  ;;  %v426_v4 = vsel %vm83_vm2, %v422_v41, %v416_v16  ;;  %v406_v10 = vpop.permute.xlu1 %405  ;;  %v715_v49 = vpop.permute.xlu2 %714 }
 0x193   :  { %v407_v5 = vsel %vm35_vm1, %v404_v2, %v406_v10  ;;  %v427_v0 = vmul.f32 %v426_v4, %v1660_v51  ;;  %v428_v39 = vmul.f32 %v425_v7, %v2732_v62  ;;  %v722_v26 = vsel %vm359_vm7, %v1994_v28, %v715_v49 }
 0x194   :  { %v414_v19 = vmul.f32 %v407_v5, %v2733_v40  ;;  %v724_v14 = vmul.f32 %v722_v26, %v1842_v30  ;;  %v2739_v26 = vld [vmem:[#allocation8_spill] sm:$0xff]  ;;  %v2332_v40 = vld [vmem:[%s2675_s2 + $0x38] ss:$0 sm:$0xff] }
 0x195   :  { %602 = vmatpush.msrb.mxu0 %v427_v0  ;;  %625 = vmatpush.msrb.mxu1 %v428_v39  ;;  %v2737_v0 = vld [vmem:[#allocation12_spill] sm:$0xff]  ;;  %2745 = vst [vmem:[#allocation18_spill] sm:$0xff] %v2332_v40 }
 0x196   :  { %672 = vmatpush.msrb.mxu3 %v414_v19  ;;  %1432 = vmatmul.msk.f32.gmra.mxu2 %vm487_vm8, %v1924_v58 }
 0x197   :  { %1433 = vmatmul.msk.f32.vlgmr.msrb.gmra.mxu3 %vm487_vm8, %v1749_v63 }
 0x199   :  { %v717_v44 = vpop.permute.xlu0 %716 }
 0x19a   :  { %v721_v29 = vsel %vm359_vm7, %v715_v49, %v717_v44  ;;  %v400_v45 = vpop.permute.xlu1 %399  ;;  %v683_v16 = vpop.permute.xlu2 %682 }
 0x19b   :  { %v409_v9 = vsel %vm35_vm1, %v400_v45, %v1970_v37  ;;  %v410_v33 = vsel %vm35_vm1, %v406_v10, %v400_v45  ;;  %v725_v60 = vmul.f32 %v721_v29, %v1891_v35  ;;  %v2738_v29 = vld [vmem:[#allocation7_spill] sm:$0xff] }
 0x19c   :  { %v411_v32 = vmul.f32 %v410_v33, %v2734_v27  ;;  %v412_v50 = vmul.f32 %v409_v9, %v2735_v8  ;;  %v2740_v33 = vld [vmem:[#allocation9_spill] sm:$0xff] }
 0x19e   :  { %603 = vmatpush.msrb.mxu0 %v411_v32  ;;  %626 = vmatpush.msrb.mxu1 %v412_v50  ;;  %v2741_v50 = vld [vmem:[#allocation11_spill] sm:$0xff] }
 0x19f   :  { %1427 = vmatmul.msk.f32.vlgmr.msrb.gmra.mxu0 %vm487_vm8, %v1749_v63  ;;  %1429 = vmatmul.msk.f32.vlgmr.msrb.gmra.mxu1 %vm487_vm8, %v1749_v63  ;;  %v690_v63 = vsel %vm271_vm6, %v2027_v55, %v683_v16 }
 0x1a0   :  { %1434 = vmatmul.msk.f32.gmra.mxu3 %vm487_vm8, %v1924_v58  ;;  %749 = vmatpush.msra.mxu0 %v724_v14  ;;  %v692_v32 = vmul.f32 %v690_v63, %v2740_v33 }
 0x1a1   :  { %772 = vmatpush.msra.mxu1 %v725_v60  ;;  %v701_v37 = vpop.permute.xlu0 %700 }
 0x1a2   :  { %v719_v46 = vpop.permute.xlu1 %718 }
 0x1a3   :  { %v720_v3 = vsel %vm359_vm7, %v717_v44, %v719_v46  ;;  %v723_v24 = vsel %vm359_vm7, %v719_v46, %v1994_v28 }
 0x1a4   :  { %v726_v22 = vmul.f32 %v720_v3, %v1858_v59  ;;  %v727_v54 = vmul.f32 %v723_v24, %v1847_v34 }
 0x1a6   :  { %795 = vmatpush.msra.mxu2 %v726_v22  ;;  %818 = vmatpush.msra.mxu3 %v727_v54 }
 0x1a7   :  { %1428 = vmatmul.msk.f32.gmra.mxu0 %vm487_vm8, %v1924_v58  ;;  %1430 = vmatmul.msk.f32.gmra.mxu1 %vm487_vm8, %v1924_v58 }
 0x1a9   :  { %v685_v28 = vpop.permute.xlu0 %684 }
 0x1aa   :  { %v703_v2 = vpop.permute.xlu1 %702  ;;  %v689_v58 = vsel %vm271_vm6, %v683_v16, %v685_v28 }
 0x1ab   :  { %v704_v12 = vsel %vm315_vm5, %v701_v37, %v703_v2  ;;  %v707_v41 = vsel %vm315_vm5, %v703_v2, %v2016_v36 }
 0x1ac   :  { %v710_v31 = vmul.f32 %v704_v12, %v1833_v47  ;;  %v711_v38 = vmul.f32 %v707_v41, %v2736_v13 }
 0x1ae   :  { %796 = vmatpush.msra.mxu2 %v710_v31  ;;  %819 = vmatpush.msra.mxu3 %v711_v38 }
 0x1b1   :  { %v699_v7 = vpop.permute.xlu0 %698 }
 0x1b2   :  { %v705_v4 = vsel %vm315_vm5, %v699_v7, %v701_v37  ;;  %v706_v10 = vsel %vm315_vm5, %v2016_v36, %v699_v7  ;;  %v687_v5 = vpop.permute.xlu1 %686  ;;  %v693_v36 = vmul.f32 %v689_v58, %v2741_v50  ;;  %v2117_v37 = vld [vmem:[%s2675_s2 + $0x30] ss:$0 sm:$0xff] }
 0x1b3   :  { %v708_v39 = vmul.f32 %v706_v10, %v2737_v0  ;;  %v709_v19 = vmul.f32 %v705_v4, %v1831_v18  ;;  %v688_v49 = vsel %vm271_vm6, %v685_v28, %v687_v5  ;;  %v691_v44 = vsel %vm271_vm6, %v687_v5, %v2027_v55  ;;  %1022 = vrot.lane.b32.xlu1 %v2117_v37, %s1511_s23 }
 0x1b4   :  { %v694_v45 = vmul.f32 %v688_v49, %v2738_v29  ;;  %v695_v9 = vmul.f32 %v691_v44, %v2739_v26 }
 0x1b5   :  { %750 = vmatpush.msra.mxu0 %v708_v39  ;;  %773 = vmatpush.msra.mxu1 %v709_v19 }
 0x1b6   :  { %797 = vmatpush.msra.mxu2 %v694_v45  ;;  %820 = vmatpush.msra.mxu3 %v695_v9 }
 0x1b7   :  { %751 = vmatpush.msra.mxu0 %v692_v32  ;;  %774 = vmatpush.msra.mxu1 %v693_v36 }
 0x1b9   :  { %v731_v55 = vpop.permute.xlu0 %730 }
 0x1ba   :  { %v729_v60 = vpop.permute.xlu1 %728 }
 0x1bb   :  { %1435 = vmatmul.msk.f32.vlgmr.msra.gmra.mxu0 %vm487_vm8, %v729_v60  ;;  %1437 = vmatmul.msk.f32.vlgmr.msra.gmra.mxu1 %vm487_vm8, %v729_v60 }
 0x1bc   :  { %1439 = vmatmul.msk.f32.vlgmr.msra.gmra.mxu2 %vm487_vm8, %v729_v60  ;;  %1441 = vmatmul.msk.f32.vlgmr.msra.gmra.mxu3 %vm487_vm8, %v729_v60 }
 0x1c3   :  { %1436 = vmatmul.msk.f32.gmra.mxu0 %vm487_vm8, %v731_v55  ;;  %1438 = vmatmul.msk.f32.gmra.mxu1 %vm487_vm8, %v731_v55 }
 0x1c4   :  { %1440 = vmatmul.msk.f32.gmra.mxu2 %vm487_vm8, %v731_v55  ;;  %1442 = vmatmul.msk.f32.gmra.mxu3 %vm487_vm8, %v731_v55 }
 0x1e1   :  { %v838_v49 = vpop.permute.xlu2 %837 }
 0x1f1   :  { %v578_v46 = vpop.f32.mrf.mxu3 }
 0x1f2   :  { %v555_v14 = vpop.f32.mrf.mxu2 }
 0x1f8   :  { %v509_v24 = vpop.f32.mrf.mxu0  ;;  %v532_v22 = vpop.f32.mrf.mxu1 }
 0x200   :  { %v512_v28 = vpop.f32.mrf.mxu0 }
 0x201   :  { %v535_v2 = vpop.f32.mrf.mxu1 }
 0x206   :  { %v558_v3 = vpop.f32.mrf.mxu2 }
 0x207   :  { %v581_v42 = vpop.f32.mrf.mxu3 }
 0x211   :  { %v651_v54 = vpop.f32.mrf.mxu2 }
 0x219   :  { %v654_v12 = vpop.f32.mrf.mxu2 }
 0x21a   :  { %v2121_v41 = vadd.f32 %v654_v12, %v558_v3  ;;  %v674_v31 = vpop.f32.mrf.mxu3 }
 0x21c   :  { %v605_v38 = vpop.f32.mrf.mxu0  ;;  %v628_v16 = vpop.f32.mrf.mxu1 }
 0x21d   :  { %v606_v39 = vadd.f32 %v605_v38, %v509_v24  ;;  %v629_v19 = vadd.f32 %v628_v16, %v532_v22  ;;  %v652_v22 = vadd.f32 %v651_v54, %v555_v14  ;;  %v675_v54 = vadd.f32 %v674_v31, %v578_v46 }
 0x223   :  { %v677_v7 = vpop.f32.mrf.mxu3 }
 0x224   :  { %v2123_v63 = vadd.f32 %v677_v7, %v581_v42  ;;  %v608_v58 = vpop.f32.mrf.mxu0  ;;  %v631_v4 = vpop.f32.mrf.mxu1 }
 0x225   :  { %v609_v10 = vadd.f32 %v608_v58, %v512_v28  ;;  %v632_v5 = vadd.f32 %v631_v4, %v535_v2  ;;  %v842_v7 = vpop.permute.xlu1 %841 }
 0x238   :  { %v753_v44 = vpop.f32.mrf.mxu0  ;;  %v776_v45 = vpop.f32.mrf.mxu1 }
 0x239   :  { %v828_v9 = vadd.f32 %v753_v44, %v606_v39  ;;  %v829_v32 = vadd.f32 %v776_v45, %v629_v19  ;;  %v2219_v45 = vpop.permute.xlu1 %1022 }
 0x23b   :  { %v844_v36 = vadd.f32 %v838_v49, %v828_v9  ;;  %v845_v60 = vadd.f32 %v838_v49, %v829_v32 }
 0x23d   :  { %v2125_v55 = vmax.f32 %v844_v36, 0.0  ;;  %v2127_v3 = vmax.f32 %v845_v60, 0.0 }
 0x23f   :  { %928 = vrot.lane.b32.xlu2 %v2127_v3, %s1497_s0  ;;  %993 = vrot.lane.b32.xlu1 %v2127_v3, %s1500_s19  ;;  %v799_v24 = vpop.f32.mrf.mxu2  ;;  %v822_v14 = vpop.f32.mrf.mxu3 }
 0x240   :  { %989 = vrot.lane.b32.xlu0 %v2125_v55, %s1500_s19  ;;  %v830_v42 = vadd.f32 %v799_v24, %v652_v22  ;;  %v831_v12 = vadd.f32 %v822_v14, %v675_v54  ;;  %v779_v46 = vpop.f32.mrf.mxu1  ;;  %v756_v4 = vpop.f32.mrf.mxu0 }
 0x241   :  { %v833_v31 = vadd.f32 %v779_v46, %v632_v5  ;;  %v832_v19 = vadd.f32 %v756_v4, %v609_v10 }
 0x242   :  { %v846_v28 = vadd.f32 %v838_v49, %v830_v42  ;;  %v847_v38 = vadd.f32 %v838_v49, %v831_v12 }
 0x243   :  { %v849_v58 = vadd.f32 %v842_v7, %v833_v31  ;;  %v848_v5 = vadd.f32 %v842_v7, %v832_v19 }
 0x244   :  { %v2147_v2 = vmax.f32 %v846_v28, 0.0  ;;  %v2161_v16 = vmax.f32 %v847_v38, 0.0 }
 0x245   :  { %v2187_v39 = vmax.f32 %v849_v58, 0.0  ;;  %v2195_v49 = vmax.f32 %v848_v5, 0.0 }
 0x247   :  { %961 = vrot.lane.b32.xlu2 %v2127_v3, %s1498_s18  ;;  %864 = vrot.lane.b32.xlu1 %v2127_v3, %s1493_s14  ;;  %v802_v32 = vpop.f32.mrf.mxu2  ;;  %v825_v36 = vpop.f32.mrf.mxu3 }
 0x248   :  { %957 = vrot.lane.b32.xlu0 %v2125_v55, %s1498_s18  ;;  %v834_v60 = vadd.f32 %v802_v32, %v2121_v41  ;;  %v835_v24 = vadd.f32 %v825_v36, %v2123_v63 }
 0x24a   :  { %v850_v22 = vadd.f32 %v842_v7, %v834_v60  ;;  %v851_v42 = vadd.f32 %v842_v7, %v835_v24 }
 0x24c   :  { %v2242_v12 = vmax.f32 %v850_v22, 0.0  ;;  %v2244_v38 = vmax.f32 %v851_v42, 0.0 }
 0x24f   :  { %896 = vrot.lane.b32.xlu2 %v2127_v3, %s1494_s15  ;;  %1221 = vrot.lane.b32.xlu1 %v2125_v55, %s1505_s21 }
 0x250   :  { %1257 = vrot.lane.b32.xlu0 %v2127_v3, %s1509_s22 }
 0x257   :  { %1189 = vrot.lane.b32.xlu1 %v2125_v55, %s1504_s20  ;;  %924 = vrot.lane.b32.xlu2 %v2125_v55, %s1497_s0 }
 0x258   :  { %932 = vrot.lane.b32.xlu0 %v2147_v2, %s1497_s0 }
 0x25f   :  { %997 = vrot.lane.b32.xlu1 %v2147_v2, %s1500_s19  ;;  %1253 = vrot.lane.b32.xlu2 %v2125_v55, %s1509_s22 }
 0x260   :  { %965 = vrot.lane.b32.xlu0 %v2147_v2, %s1498_s18 }
 0x267   :  { %936 = vrot.lane.b32.xlu1 %v2161_v16, %s1497_s0  ;;  %892 = vrot.lane.b32.xlu2 %v2125_v55, %s1494_s15 }
 0x268   :  { %900 = vrot.lane.b32.xlu0 %v2147_v2, %s1494_s15 }
 0x26f   :  { %969 = vrot.lane.b32.xlu1 %v2161_v16, %s1498_s18  ;;  %860 = vrot.lane.b32.xlu2 %v2125_v55, %s1493_s14 }
 0x270   :  { %872 = vrot.lane.b32.xlu0 %v2161_v16, %s1493_s14 }
 0x277   :  { %904 = vrot.lane.b32.xlu1 %v2161_v16, %s1494_s15  ;;  %1225 = vrot.lane.b32.xlu2 %v2127_v3, %s1505_s21 }
 0x278   :  { %1261 = vrot.lane.b32.xlu0 %v2147_v2, %s1509_s22 }
 0x27f   :  { %1265 = vrot.lane.b32.xlu1 %v2161_v16, %s1509_s22  ;;  %1001 = vrot.lane.b32.xlu2 %v2161_v16, %s1500_s19 }
 0x280   :  { %1233 = vrot.lane.b32.xlu0 %v2161_v16, %s1505_s21 }
 0x287   :  { %868 = vrot.lane.b32.xlu2 %v2147_v2, %s1493_s14  ;;  %930 = vrot.lane.b32.xlu1 %v2187_v39, %s1497_s0 }
 0x288   :  { %1201 = vrot.lane.b32.xlu0 %v2161_v16, %s1504_s20 }
 0x28f   :  { %1229 = vrot.lane.b32.xlu2 %v2147_v2, %s1505_s21  ;;  %963 = vrot.lane.b32.xlu1 %v2187_v39, %s1498_s18 }
 0x290   :  { %991 = vrot.lane.b32.xlu0 %v2195_v49, %s1500_s19 }
 0x297   :  { %1197 = vrot.lane.b32.xlu2 %v2147_v2, %s1504_s20  ;;  %1255 = vrot.lane.b32.xlu1 %v2195_v49, %s1509_s22 }
 0x298   :  { %995 = vrot.lane.b32.xlu0 %v2187_v39, %s1500_s19 }
 0x299   :  { %v929_v10 = vpop.permute.xlu2 %928 }
 0x29f   :  { %898 = vrot.lane.b32.xlu2 %v2187_v39, %s1494_s15  ;;  %894 = vrot.lane.b32.xlu1 %v2195_v49, %s1494_s15 }
 0x2a0   :  { %959 = vrot.lane.b32.xlu0 %v2195_v49, %s1498_s18 }
 0x2a1   :  { %v962_v44 = vpop.permute.xlu2 %961 }
 0x2a7   :  { %1259 = vrot.lane.b32.xlu1 %v2187_v39, %s1509_s22  ;;  %926 = vrot.lane.b32.xlu2 %v2195_v49, %s1497_s0 }
 0x2a8   :  { %1223 = vrot.lane.b32.xlu0 %v2195_v49, %s1505_s21 }
 0x2a9   :  { %v897_v9 = vpop.permute.xlu2 %896 }
 0x2af   :  { %1227 = vrot.lane.b32.xlu1 %v2187_v39, %s1505_s21  ;;  %866 = vrot.lane.b32.xlu2 %v2187_v39, %s1493_s14 }
 0x2b0   :  { %862 = vrot.lane.b32.xlu0 %v2195_v49, %s1493_s14 }
 0x2b1   :  { %v925_v28 = vpop.permute.xlu2 %924  ;;  %v994_v14 = vpop.permute.xlu1 %993 }
 0x2b2   :  { %v2233_v54 = vsel %vm127_vm0, %v925_v28, %v929_v10  ;;  %v2235_v41 = vpop.permute.xlu0 %989 }
 0x2b3   :  { %v2240_v63 = vsel %vm227_vm4, %v2235_v41, %v994_v14 }
 0x2b7   :  { %999 = vrot.lane.b32.xlu1 %v2242_v12, %s1500_s19  ;;  %1003 = vrot.lane.b32.xlu2 %v2244_v38, %s1500_s19 }
 0x2b8   :  { %1191 = vrot.lane.b32.xlu0 %v2195_v49, %s1504_s20 }
 0x2b9   :  { %v2252_v46 = vpop.permute.xlu2 %1253  ;;  %v865_v31 = vpop.permute.xlu1 %864 }
 0x2ba   :  { %v958_v7 = vpop.permute.xlu0 %957 }
 0x2bb   :  { %v2256_v58 = vsel %vm171_vm3, %v958_v7, %v962_v44 }
 0x2bf   :  { %906 = vrot.lane.b32.xlu1 %v2244_v38, %s1494_s15  ;;  %934 = vrot.lane.b32.xlu2 %v2242_v12, %s1497_s0 }
 0x2c0   :  { %938 = vrot.lane.b32.xlu0 %v2244_v38, %s1497_s0  ;;  %s1513_s0 = smov 32  }
 0x2c1   :  { %v893_v4 = vpop.permute.xlu2 %892  ;;  %v1222_v19 = vpop.permute.xlu1 %1221 }
 0x2c2   :  { %v2266_v5 = vsel %vm83_vm2, %v893_v4, %v897_v9  ;;  %v1258_v32 = vpop.permute.xlu0 %1257 }
 0x2c3   :  { %v2271_v36 = vsel %vm359_vm7, %v2252_v46, %v1258_v32 }
 0x2c4   :  { %2742 = vst [vmem:[#allocation2_spill] sm:$0xff] %v2271_v36 }
 0x2c7   :  { %874 = vrot.lane.b32.xlu1 %v2244_v38, %s1493_s14  ;;  %967 = vrot.lane.b32.xlu2 %v2242_v12, %s1498_s18 }
 0x2c8   :  { %971 = vrot.lane.b32.xlu0 %v2244_v38, %s1498_s18 }
 0x2c9   :  { %v861_v60 = vpop.permute.xlu2 %860  ;;  %v2279_v24 = vpop.permute.xlu1 %1189 }
 0x2ca   :  { %2743 = vst [vmem:[#allocation3_spill] sm:$0xff] %v2279_v24  ;;  %v2283_v22 = vsel %vm35_vm1, %v861_v60, %v865_v31  ;;  %v933_v42 = vpop.permute.xlu0 %932 }
 0x2cb   :  { %v2287_v26 = vsel %vm127_vm0, %v929_v10, %v933_v42 }
 0x2cf   :  { %1231 = vrot.lane.b32.xlu1 %v2242_v12, %s1505_s21  ;;  %1263 = vrot.lane.b32.xlu2 %v2242_v12, %s1509_s22 }
 0x2d0   :  { %902 = vrot.lane.b32.xlu0 %v2242_v12, %s1494_s15 }
 0x2d1   :  { %v1226_v29 = vpop.permute.xlu2 %1225  ;;  %v998_v24 = vpop.permute.xlu1 %997 }
 0x2d2   :  { %v2297_v13 = vsel %vm315_vm5, %v1222_v19, %v1226_v29  ;;  %v966_v47 = vpop.permute.xlu0 %965  ;;  %v2301_v10 = vsel %vm227_vm4, %v994_v14, %v998_v24 }
 0x2d3   :  { %2744 = vst [vmem:[#allocation5_spill] sm:$0xff] %v2297_v13  ;;  %v2305_v34 = vsel %vm171_vm3, %v962_v44, %v966_v47 }
 0x2d7   :  { %1199 = vrot.lane.b32.xlu1 %v2242_v12, %s1504_s20  ;;  %1235 = vrot.lane.b32.xlu2 %v2244_v38, %s1505_s21 }
 0x2d8   :  { %870 = vrot.lane.b32.xlu0 %v2242_v12, %s1493_s14 }
 0x2d9   :  { %v1002_v59 = vpop.permute.xlu2 %1001  ;;  %v937_v33 = vpop.permute.xlu1 %936 }
 0x2da   :  { %v2315_v13 = vsel %vm227_vm4, %v998_v24, %v1002_v59  ;;  %v901_v14 = vpop.permute.xlu0 %900  ;;  %v2319_v44 = vsel %vm127_vm0, %v933_v42, %v937_v33  ;;  %v2323_v0 = vsel %vm127_vm0, %v937_v33, %v925_v28 }
 0x2db   :  { %v2327_v36 = vsel %vm83_vm2, %v897_v9, %v901_v14 }
 0x2df   :  { %1203 = vrot.lane.b32.xlu2 %v2244_v38, %s1504_s20  ;;  %1291 = vrot.lane.b32.xlu1 %v2332_v40, %s1513_s0 }
 0x2e0   :  { %1267 = vrot.lane.b32.xlu0 %v2244_v38, %s1509_s22 }
 0x2e1   :  { %v869_v33 = vpop.permute.xlu2 %868  ;;  %v970_v28 = vpop.permute.xlu1 %969 }
 0x2e2   :  { %v2341_v9 = vsel %vm35_vm1, %v865_v31, %v869_v33  ;;  %v873_v24 = vpop.permute.xlu0 %872  ;;  %v2345_v42 = vsel %vm171_vm3, %v966_v47, %v970_v28  ;;  %v2349_v48 = vsel %vm171_vm3, %v970_v28, %v958_v7 }
 0x2e3   :  { %2746 = vst [vmem:[#allocation19_spill] sm:$0xff] %v2341_v9  ;;  %v2353_v40 = vsel %vm35_vm1, %v869_v33, %v873_v24  ;;  %v2357_v30 = vsel %vm35_vm1, %v873_v24, %v861_v60 }
 0x2e4   :  { %2747 = vst [vmem:[#allocation20_spill] sm:$0xff] %v2353_v40 }
 0x2e5   :  { %2748 = vst [vmem:[#allocation21_spill] sm:$0xff] %v2357_v30 }
 0x2e7   :  { %1195 = vrot.lane.b32.xlu2 %v2187_v39, %s1504_s20 }
 0x2e8   :  { %1289 = vrot.lane.b32.xlu0 %v2117_v37, %s1513_s0 }
 0x2e9   :  { %v1230_v31 = vpop.permute.xlu2 %1229  ;;  %v905_v47 = vpop.permute.xlu1 %904 }
 0x2ea   :  { %v2364_v9 = vsel %vm315_vm5, %v1226_v29, %v1230_v31  ;;  %v1262_v7 = vpop.permute.xlu0 %1261  ;;  %v2368_v33 = vsel %vm83_vm2, %v901_v14, %v905_v47  ;;  %v2372_v60 = vsel %vm83_vm2, %v905_v47, %v893_v4 }
 0x2eb   :  { %2749 = vst [vmem:[#allocation22_spill] sm:$0xff] %v2364_v9  ;;  %v2376_v28 = vsel %vm359_vm7, %v1258_v32, %v1262_v7 }
 0x2f0   :  { %1193 = vrot.lane.b32.xlu0 %v2127_v3, %s1504_s20 }
 0x2f1   :  { %v2380_v24 = vpop.permute.xlu2 %1197  ;;  %v1266_v29 = vpop.permute.xlu1 %1265 }
 0x2f2   :  { %2750 = vst [vmem:[#allocation23_spill] sm:$0xff] %v2380_v24  ;;  %v1234_v40 = vpop.permute.xlu0 %1233  ;;  %v2384_v50 = vsel %vm359_vm7, %v1262_v7, %v1266_v29  ;;  %v2389_v4 = vsel %vm359_vm7, %v1266_v29, %v2252_v46 }
 0x2f3   :  { %2751 = vst [vmem:[#allocation24_spill] sm:$0xff] %v2384_v50  ;;  %v2393_v32 = vsel %vm315_vm5, %v1230_v31, %v1234_v40  ;;  %v2397_v14 = vsel %vm315_vm5, %v1234_v40, %v1222_v19  ;;  %v1013_v19 = vmul.f32 %v2240_v63, %v1771_v6 }
 0x2f4   :  { %2752 = vst [vmem:[#allocation25_spill] sm:$0xff] %v2389_v4 }
 0x2f5   :  { %2753 = vst [vmem:[#allocation26_spill] sm:$0xff] %v2393_v32  ;;  %v1011_v32 = vsel %vm227_vm4, %v1002_v59, %v2235_v41 }
 0x2f6   :  { %2754 = vst [vmem:[#allocation27_spill] sm:$0xff] %v2397_v14 }
 0x2f9   :  { %v2399_v47 = vpop.permute.xlu2 %898  ;;  %v931_v24 = vpop.permute.xlu1 %930 }
 0x2fa   :  { %v2401_v9 = vpop.permute.xlu0 %1201 }
 0x2fb   :  { %2755 = vst [vmem:[#allocation28_spill] sm:$0xff] %v2401_v9 }
 0x301   :  { %v2403_v7 = vpop.permute.xlu2 %926  ;;  %v964_v50 = vpop.permute.xlu1 %963 }
 0x302   :  { %v992_v30 = vpop.permute.xlu0 %991 }
 0x309   :  { %v2405_v18 = vpop.permute.xlu2 %866  ;;  %v2407_v46 = vpop.permute.xlu1 %1255 }
 0x30a   :  { %2756 = vst [vmem:[#allocation29_spill] sm:$0xff] %v2407_v46  ;;  %v996_v29 = vpop.permute.xlu0 %995 }
 0x30b   :  { %v1010_v31 = vsel %vm227_vm4, %v992_v30, %v996_v29 }
 0x30c   :  { %v1017_v40 = vmul.f32 %v1010_v31, %v1771_v6  ;;  %v1016_v6 = vmul.f32 %v1011_v32, %v1789_v23 }
 0x30e   :  { %1037 = vmatpush.msrb.mxu0 %v1017_v40 }
 0x310   :  { %1038 = vmatpush.msrb.mxu0 %v1013_v19 }
 0x311   :  { %v1004_v9 = vpop.permute.xlu2 %1003  ;;  %v2414_v14 = vpop.permute.xlu1 %894 }
 0x312   :  { %v1012_v4 = vsel %vm227_vm4, %v1004_v9, %v992_v30  ;;  %v960_v46 = vpop.permute.xlu0 %959  ;;  %1039 = vmatpush.msrb.mxu0 %v2195_v49 }
 0x313   :  { %v1020_v31 = vmul.f32 %v1012_v4, %v1789_v23 }
 0x314   :  { %1040 = vmatpush.msrb.mxu0 %v2125_v55 }
 0x315   :  { %1097 = vmatpush.msrb.mxu3 %v1020_v31  ;;  %v1014_v31 = vmul.f32 %v2301_v10, %v1769_v15 }
 0x317   :  { %1098 = vmatpush.msrb.mxu3 %v1016_v6  ;;  %v1015_v6 = vmul.f32 %v2315_v13, %v1773_v17 }
 0x319   :  { %v2425_v63 = vpop.permute.xlu2 %934  ;;  %1099 = vmatpush.msrb.mxu3 %v2244_v38  ;;  %v2428_v40 = vpop.permute.xlu1 %1259 }
 0x31a   :  { %v2430_v59 = vpop.permute.xlu0 %1223 }
 0x31b   :  { %1100 = vmatpush.msrb.mxu3 %v2161_v16 }
 0x321   :  { %v968_v30 = vpop.permute.xlu2 %967  ;;  %v2433_v49 = vpop.permute.xlu1 %1227 }
 0x322   :  { %v2435_v41 = vpop.permute.xlu0 %862 }
 0x329   :  { %v1000_v55 = vpop.permute.xlu1 %999  ;;  %v2443_v32 = vpop.permute.xlu2 %1263 }
 0x32a   :  { %v2437_v4 = vpop.permute.xlu0 %1191  ;;  %v1006_v23 = vsel %vm227_vm4, %v1000_v55, %v1004_v9  ;;  %v1008_v38 = vsel %vm227_vm4, %v996_v29, %v1000_v55  ;;  %v978_v9 = vsel %vm171_vm3, %v960_v46, %v964_v50  ;;  %v976_v29 = vsel %vm171_vm3, %v964_v50, %v968_v30 }
 0x32b   :  { %v1018_v19 = vmul.f32 %v1008_v38, %v1769_v15  ;;  %v1019_v16 = vmul.f32 %v1006_v23, %v1773_v17  ;;  %v986_v10 = vmul.f32 %v978_v9, %v1716_v25  ;;  %v945_v17 = vsel %vm127_vm0, %v2403_v7, %v931_v24 }
 0x32c   :  { %v987_v13 = vmul.f32 %v976_v29, %v1698_v11  ;;  %v982_v50 = vmul.f32 %v2256_v58, %v1716_v25  ;;  %v953_v23 = vmul.f32 %v945_v17, %v1671_v57  ;;  %v913_v25 = vsel %vm83_vm2, %v2414_v14, %v2399_v47 }
 0x32d   :  { %1057 = vmatpush.msrb.mxu1 %v1018_v19  ;;  %1077 = vmatpush.msrb.mxu2 %v1019_v16  ;;  %v949_v58 = vmul.f32 %v2233_v54, %v1671_v57  ;;  %v921_v38 = vmul.f32 %v913_v25, %v2732_v62  ;;  %v948_v9 = vmul.f32 %v2323_v0, %v1646_v43  ;;  %v2761_v25 = vld [vmem:[#allocation11_spill] sm:$0xff] }
 0x32f   :  { %1058 = vmatpush.msrb.mxu1 %v1014_v31  ;;  %1078 = vmatpush.msrb.mxu2 %v1015_v6  ;;  %v917_v31 = vmul.f32 %v2266_v5, %v2732_v62 }
 0x331   :  { %1059 = vmatpush.msrb.mxu1 %v2187_v39  ;;  %1079 = vmatpush.msrb.mxu2 %v2242_v12  ;;  %v2457_v55 = vpop.permute.xlu1 %906  ;;  %v943_v39 = vsel %vm127_vm0, %v931_v24, %v2425_v63  ;;  %v2471_v12 = vpop.permute.xlu2 %1235 }
 0x332   :  { %v939_v15 = vpop.permute.xlu0 %938 }
 0x333   :  { %1060 = vmatpush.msrb.mxu1 %v2127_v3  ;;  %1080 = vmatpush.msrb.mxu2 %v2147_v2  ;;  %v983_v3 = vmul.f32 %v2305_v34, %v1698_v11  ;;  %v954_v2 = vmul.f32 %v943_v39, %v1679_v61  ;;  %v950_v34 = vmul.f32 %v2287_v26, %v1679_v61 }
 0x334   :  { %v881_v61 = vsel %vm35_vm1, %v2435_v41, %v2405_v18  ;;  %v947_v26 = vsel %vm127_vm0, %v939_v15, %v2403_v7  ;;  %v941_v62 = vsel %vm127_vm0, %v2425_v63, %v939_v15  ;;  %v1272_v7 = vsel %vm359_vm7, %v2428_v40, %v2443_v32 }
 0x335   :  { %1061 = vmatpush.msrb.mxu1 %v986_v10  ;;  %1081 = vmatpush.msrb.mxu2 %v987_v13  ;;  %v889_v6 = vmul.f32 %v881_v61, %v2735_v8  ;;  %v885_v63 = vmul.f32 %v2283_v22, %v2735_v8  ;;  %v1282_v15 = vmul.f32 %v1272_v7, %v1891_v35  ;;  %v2757_v13 = vld [vmem:[#allocation13_spill] sm:$0xff] }
 0x336   :  { %v919_v10 = vmul.f32 %v2368_v33, %v1669_v56  ;;  %v2760_v33 = vld [vmem:[#allocation22_spill] sm:$0xff] }
 0x337   :  { %1062 = vmatpush.msrb.mxu1 %v982_v50  ;;  %1082 = vmatpush.msrb.mxu2 %v983_v3 }
 0x338   :  { %1444 = vmatmul.msk.f32.vlgmr.msrb.gmra.mxu1 %vm1024_vm9, %v2219_v45  ;;  %1445 = vmatmul.msk.f32.vlgmr.msrb.gmra.mxu2 %vm1024_vm9, %v2219_v45 }
 0x339   :  { %1139 = vmatpush.msra.mxu1 %v953_v23  ;;  %v2487_v11 = vpop.permute.xlu1 %874  ;;  %1159 = vmatpush.msra.mxu2 %v954_v2  ;;  %v2514_v5 = vpop.permute.xlu2 %1203 }
 0x33a   :  { %v972_v24 = vpop.permute.xlu0 %971 }
 0x33b   :  { %v974_v19 = vsel %vm171_vm3, %v968_v30, %v972_v24  ;;  %v980_v16 = vsel %vm171_vm3, %v972_v24, %v960_v46  ;;  %1140 = vmatpush.msra.mxu1 %v949_v58  ;;  %1160 = vmatpush.msra.mxu2 %v950_v34  ;;  %v981_v46 = vmul.f32 %v2349_v48, %v1710_v21  ;;  %v2762_v58 = vld [vmem:[#allocation15_spill] sm:$0xff]  ;;  %v2763_v24 = vld [vmem:[#allocation6_spill] sm:$0xff] }
 0x33c   :  { %v985_v57 = vmul.f32 %v980_v16, %v1710_v21  ;;  %v988_v54 = vmul.f32 %v974_v19, %v1754_v1  ;;  %v984_v30 = vmul.f32 %v2345_v42, %v1754_v1  ;;  %v952_v48 = vmul.f32 %v947_v26, %v1646_v43  ;;  %v2764_v19 = vld [vmem:[#allocation4_spill] sm:$0xff] }
 0x33d   :  { %1141 = vmatpush.msra.mxu1 %v921_v38  ;;  %v955_v21 = vmul.f32 %v941_v62, %v1664_v53  ;;  %v915_v1 = vsel %vm83_vm2, %v2457_v55, %v2414_v14  ;;  %v951_v14 = vmul.f32 %v2319_v44, %v1664_v53  ;;  %v883_v53 = vsel %vm35_vm1, %v2487_v11, %v2435_v41  ;;  %v2768_v26 = vld [vmem:[#allocation20_spill] sm:$0xff] }
 0x33e   :  { %1041 = vmatpush.msrb.mxu0 %v985_v57  ;;  %1101 = vmatpush.msrb.mxu3 %v988_v54  ;;  %v920_v22 = vmul.f32 %v915_v1, %v1660_v51  ;;  %v918_v41 = vmul.f32 %v2327_v36, %v1662_v52  ;;  %v888_v17 = vmul.f32 %v883_v53, %v2734_v27  ;;  %v2759_v36 = vld [vmem:[#allocation21_spill] sm:$0xff]  ;;  %v2766_v57 = vld [vmem:[#allocation2_spill] sm:$0xff] }
 0x33f   :  { %1142 = vmatpush.msra.mxu1 %v917_v31  ;;  %v1277_v54 = vmul.f32 %v2766_v57, %v2762_v58  ;;  %v2767_v31 = vld [vmem:[#allocation19_spill] sm:$0xff]  ;;  %v2776_v53 = vld [vmem:[#allocation14_spill] sm:$0xff] }
 0x340   :  { %1042 = vmatpush.msrb.mxu0 %v981_v46  ;;  %1102 = vmatpush.msrb.mxu3 %v984_v30  ;;  %v886_v61 = vmul.f32 %v2767_v31, %v2763_v24  ;;  %v887_v46 = vmul.f32 %v2768_v26, %v2764_v19  ;;  %v2769_v30 = vld [vmem:[#allocation12_spill] sm:$0xff] }
 0x341   :  { %1443 = vmatmul.msk.f32.vlgmr.msrb.gmra.mxu0 %vm1024_vm9, %v2219_v45  ;;  %1446 = vmatmul.msk.f32.vlgmr.msrb.gmra.mxu3 %vm1024_vm9, %v2219_v45  ;;  %v2531_v42 = vpop.permute.xlu1 %1231 }
 0x342   :  { %1119 = vmatpush.msra.mxu0 %v952_v48  ;;  %1143 = vmatpush.msra.mxu1 %v889_v6  ;;  %v903_v29 = vpop.permute.xlu0 %902  ;;  %v1240_v44 = vsel %vm315_vm5, %v2433_v49, %v2531_v42  ;;  %v2770_v6 = vld [vmem:[#allocation5_spill] sm:$0xff] }
 0x343   :  { %1179 = vmatpush.msra.mxu3 %v955_v21  ;;  %v909_v45 = vsel %vm83_vm2, %v903_v29, %v2457_v55  ;;  %v911_v8 = vsel %vm83_vm2, %v2399_v47, %v903_v29  ;;  %v1278_v47 = vmul.f32 %v2376_v28, %v1891_v35  ;;  %v916_v55 = vmul.f32 %v2372_v60, %v1660_v51  ;;  %v2758_v35 = vld [vmem:[#allocation29_spill] sm:$0xff]  ;;  %v1196_v60 = vpop.permute.xlu2 %1195 }
 0x344   :  { %v922_v43 = vmul.f32 %v911_v8, %v1662_v52  ;;  %v923_v0 = vmul.f32 %v909_v45, %v1669_v56  ;;  %1120 = vmatpush.msra.mxu0 %v948_v9  ;;  %1144 = vmatpush.msra.mxu1 %v885_v63  ;;  %v1250_v50 = vmul.f32 %v1240_v44, %v2757_v13  ;;  %v2771_v63 = vld [vmem:[#allocation9_spill] sm:$0xff]  ;;  %v2774_v8 = vld [vmem:[#allocation24_spill] sm:$0xff] }
 0x345   :  { %1180 = vmatpush.msra.mxu3 %v951_v14  ;;  %1448 = vmatmul.msk.f32.vlgmr.msra.gmra.mxu1 %vm1024_vm9, %v2117_v37  ;;  %v1274_v51 = vsel %vm359_vm7, %v2758_v35, %v2428_v40  ;;  %v884_v56 = vmul.f32 %v2759_v36, %v2734_v27  ;;  %v1246_v28 = vmul.f32 %v2760_v33, %v2757_v13  ;;  %v1514_v27 = vmov 16   ;;  %v2772_v29 = vld [vmem:[#allocation17_spill] sm:$0xff]  ;;  %v2783_v36 = vld [vmem:[#allocation7_spill] sm:$0xff] }
 0x346   :  { %1327 = vmatpush.msrb.mxu1 %v1282_v15  ;;  %1121 = vmatpush.msra.mxu0 %v920_v22  ;;  %v1281_v34 = vmul.f32 %v1274_v51, %v2762_v58  ;;  %v1210_v62 = vsel %vm271_vm6, %v2437_v4, %v1196_v60  ;;  %v1245_v7 = vmul.f32 %v2770_v6, %v2769_v30  ;;  %v2773_v15 = vld [vmem:[#allocation16_spill] sm:$0xff] }
 0x347   :  { %1161 = vmatpush.msra.mxu2 %v922_v43  ;;  %1181 = vmatpush.msra.mxu3 %v923_v0  ;;  %v1217_v9 = vmul.f32 %v1210_v62, %v2771_v63  ;;  %v1244_v22 = vsel %vm315_vm5, %v2471_v12, %v2430_v59  ;;  %v2775_v43 = vld [vmem:[#allocation25_spill] sm:$0xff] }
 0x348   :  { %1328 = vmatpush.msrb.mxu1 %v1278_v47  ;;  %1122 = vmatpush.msra.mxu0 %v916_v55  ;;  %v1280_v0 = vmul.f32 %v2775_v43, %v2773_v15  ;;  %v2777_v47 = vld [vmem:[#allocation10_spill] sm:$0xff] }
 0x349   :  { %1162 = vmatpush.msra.mxu2 %v918_v41  ;;  %1182 = vmatpush.msra.mxu3 %v919_v10  ;;  %v1200_v52 = vpop.permute.xlu1 %1199  ;;  %v1252_v55 = vmul.f32 %v1244_v22, %v2777_v47  ;;  %v2778_v41 = vld [vmem:[#allocation26_spill] sm:$0xff] }
 0x34a   :  { %1329 = vmatpush.msrb.mxu1 %v1250_v50  ;;  %1123 = vmatpush.msra.mxu0 %v888_v17  ;;  %v871_v39 = vpop.permute.xlu0 %870  ;;  %v1208_v3 = vsel %vm271_vm6, %v1196_v60, %v1200_v52  ;;  %v1247_v10 = vmul.f32 %v2778_v41, %v2776_v53  ;;  %v2779_v17 = vld [vmem:[#allocation27_spill] sm:$0xff]  ;;  %v2780_v50 = vld [vmem:[#allocation28_spill] sm:$0xff] }
 0x34b   :  { %v877_v40 = vsel %vm35_vm1, %v871_v39, %v2487_v11  ;;  %v879_v23 = vsel %vm35_vm1, %v2405_v18, %v871_v39  ;;  %v1218_v2 = vmul.f32 %v1208_v3, %v2761_v25  ;;  %1490 = vset.pattern.permute.xlu1 %v1514_v27  ;;  %v1242_v11 = vsel %vm315_vm5, %v2430_v59, %v2433_v49  ;;  %v2765_v18 = vld [vmem:[#allocation18_spill] sm:$0xff]  ;;  %v2782_v60 = vld [vmem:[#allocation3_spill] sm:$0xff] }
 0x34c   :  { %v890_v38 = vmul.f32 %v879_v23, %v2763_v24  ;;  %v891_v16 = vmul.f32 %v877_v40, %v2764_v19  ;;  %1330 = vmatpush.msrb.mxu1 %v1246_v28  ;;  %1124 = vmatpush.msra.mxu0 %v884_v56  ;;  %v1249_v49 = vmul.f32 %v1242_v11, %v2769_v30 }
 0x34d   :  { %1447 = vmatmul.msk.f32.vlgmr.msra.gmra.mxu0 %vm1024_vm9, %v2117_v37  ;;  %1382 = vperm.xlu1 %1490, %v2765_v18   ;;  %v1212_v59 = vsel %vm271_vm6, %v2514_v5, %v2437_v4  ;;  %v1248_v13 = vmul.f32 %v2779_v17, %v2777_v47  ;;  %v2784_v4 = vld [vmem:[#allocation8_spill] sm:$0xff] }
 0x34e   :  { %1307 = vmatpush.msrb.mxu0 %v1281_v34  ;;  %1163 = vmatpush.msra.mxu2 %v890_v38 }
 0x34f   :  { %1183 = vmatpush.msra.mxu3 %v891_v16  ;;  %1331 = vmatpush.msrb.mxu1 %v1218_v2 }
 0x350   :  { %1308 = vmatpush.msrb.mxu0 %v1277_v54  ;;  %1164 = vmatpush.msra.mxu2 %v886_v61 }
 0x351   :  { %1184 = vmatpush.msra.mxu3 %v887_v46  ;;  %1449 = vmatmul.msk.f32.vlgmr.msra.gmra.mxu2 %vm1024_vm9, %v2117_v37  ;;  %v1292_v33 = vpop.permute.xlu1 %1291 }
 0x352   :  { %1309 = vmatpush.msrb.mxu0 %v1249_v49  ;;  %1450 = vmatmul.msk.f32.vlgmr.msra.gmra.mxu3 %vm1024_vm9, %v2117_v37  ;;  %v1268_v48 = vpop.permute.xlu0 %1267  ;;  %v1238_v37 = vsel %vm315_vm5, %v2531_v42, %v2471_v12  ;;  %v1206_v42 = vsel %vm271_vm6, %v1200_v52, %v2514_v5  ;;  %v1211_v52 = vsel %vm271_vm6, %v2780_v50, %v2782_v60 }
 0x353   :  { %v1270_v21 = vsel %vm359_vm7, %v2443_v32, %v1268_v48  ;;  %v1276_v1 = vsel %vm359_vm7, %v1268_v48, %v2758_v35  ;;  %1491 = vset.pattern.permute.xlu0 %v1514_v27  ;;  %v1279_v32 = vmul.f32 %v2774_v8, %v2772_v29  ;;  %v1251_v44 = vmul.f32 %v1238_v37, %v2776_v53  ;;  %v2781_v35 = vld [vmem:[#allocation23_spill] sm:$0xff] }
 0x354   :  { %v1283_v14 = vmul.f32 %v1270_v21, %v2772_v29  ;;  %v1284_v45 = vmul.f32 %v1276_v1, %v2773_v15  ;;  %1310 = vmatpush.msrb.mxu0 %v1245_v7  ;;  %v1205_v51 = vsel %vm271_vm6, %v2781_v35, %v2780_v50  ;;  %v1219_v56 = vmul.f32 %v1206_v42, %v2783_v36 }
 0x355   :  { %v1220_v5 = vmul.f32 %v1212_v59, %v2784_v4  ;;  %v1215_v28 = vmul.f32 %v1205_v51, %v2783_v36  ;;  %v1216_v39 = vmul.f32 %v1211_v52, %v2784_v4 }
 0x356   :  { %1311 = vmatpush.msrb.mxu0 %v1217_v9  ;;  %1347 = vmatpush.msrb.mxu2 %v1283_v14 }
 0x357   :  { %1367 = vmatpush.msrb.mxu3 %v1284_v45  ;;  %v2785_v45 = vlaneseq }
 0x358   :  { %1348 = vmatpush.msrb.mxu2 %v1279_v32 }
 0x359   :  { %1368 = vmatpush.msrb.mxu3 %v1280_v0  ;;  %vm1405_vm14 = vcmp.lt.s32.totalorder %v2785_v45, 512 }
 0x35a   :  { %v1290_v12 = vpop.permute.xlu0 %1289  ;;  %1349 = vmatpush.msrb.mxu2 %v1251_v44 }
 0x35b   :  { %1369 = vmatpush.msrb.mxu3 %v1252_v55  ;;  %v1294_v3 = vsel %vm1293_vm10, %v1290_v12, %v1292_v33 }
 0x35c   :  { %1350 = vmatpush.msrb.mxu2 %v1247_v10 }
 0x35d   :  { %1370 = vmatpush.msrb.mxu3 %v1248_v13 }
 0x35e   :  { %1351 = vmatpush.msrb.mxu2 %v1219_v56 }
 0x35f   :  { %1371 = vmatpush.msrb.mxu3 %v1220_v5 }
 0x360   :  { %1352 = vmatpush.msrb.mxu2 %v1215_v28 }
 0x361   :  { %1372 = vmatpush.msrb.mxu3 %v1216_v39  ;;  %1453 = vmatmul.msk.f32.vlgmr.msrb.gmra.mxu2 %vm1024_vm9, %v1294_v3 }
 0x362   :  { %1454 = vmatmul.msk.f32.vlgmr.msrb.gmra.mxu3 %vm1024_vm9, %v1294_v3  ;;  %v1194_v40 = vpop.permute.xlu0 %1193 }
 0x363   :  { %v1207_v23 = vsel %vm271_vm6, %v1194_v40, %v2781_v35  ;;  %v1209_v2 = vsel %vm271_vm6, %v2782_v60, %v1194_v40 }
 0x364   :  { %v1213_v27 = vmul.f32 %v1209_v2, %v2771_v63  ;;  %v1214_v58 = vmul.f32 %v1207_v23, %v2761_v25 }
 0x366   :  { %1312 = vmatpush.msrb.mxu0 %v1213_v27  ;;  %1332 = vmatpush.msrb.mxu1 %v1214_v58 }
 0x367   :  { %1451 = vmatmul.msk.f32.vlgmr.msrb.gmra.mxu0 %vm1024_vm9, %v1294_v3  ;;  %1452 = vmatmul.msk.f32.vlgmr.msrb.gmra.mxu1 %vm1024_vm9, %v1294_v3 }
 0x3b5   :  { %v1064_v34 = vpop.f32.mrf.mxu1 }
 0x3bb   :  { %v1084_v38 = vpop.f32.mrf.mxu2 }
 0x3be   :  { %v1044_v24 = vpop.f32.mrf.mxu0 }
 0x3bf   :  { %v1383_v31 = vpop.permute.xlu1 %1382 }
 0x3c2   :  { %v1146_v16 = vpop.f32.mrf.mxu1 }
 0x3c3   :  { %v1147_v20 = vadd.f32 %v1146_v16, %v1064_v34 }
 0x3c4   :  { %v1104_v19 = vpop.f32.mrf.mxu3 }
 0x3ca   :  { %v1126_v11 = vpop.f32.mrf.mxu0 }
 0x3cb   :  { %v1127_v54 = vadd.f32 %v1126_v11, %v1044_v24 }
 0x3d4   :  { %v1166_v18 = vpop.f32.mrf.mxu2 }
 0x3d5   :  { %v1186_v57 = vpop.f32.mrf.mxu3  ;;  %v1167_v61 = vadd.f32 %v1166_v18, %v1084_v38 }
 0x3d6   :  { %v1187_v26 = vadd.f32 %v1186_v57, %v1104_v19 }
 0x3e4   :  { %v1314_v25 = vpop.f32.mrf.mxu0  ;;  %v1334_v46 = vpop.f32.mrf.mxu1 }
 0x3e5   :  { %v1377_v30 = vadd.f32 %v1314_v25, %v1127_v54  ;;  %v1378_v49 = vadd.f32 %v1334_v46, %v1147_v20  ;;  %v1354_v62 = vpop.f32.mrf.mxu2  ;;  %v1374_v6 = vpop.f32.mrf.mxu3 }
 0x3e6   :  { %v1379_v7 = vadd.f32 %v1354_v62, %v1167_v61  ;;  %v1380_v48 = vadd.f32 %v1374_v6, %v1187_v26 }
 0x3e7   :  { %v1386_v21 = vadd.f32 %v1383_v31, %v1378_v49  ;;  %v1385_v9 = vadd.f32 %v1383_v31, %v1377_v30 }
 0x3e8   :  { %v1387_v1 = vadd.f32 %v1383_v31, %v1379_v7  ;;  %v1388_v63 = vadd.f32 %v1383_v31, %v1380_v48 }
 0x3e9   :  { %v1393_v29 = vrot.slane %v1386_v21, 7 }
 0x3ea   :  { %v1394_v14 = vrot.slane %v1387_v1, 6  ;;  %v1395_v15 = vrot.slane %v1388_v63, 5 }
 0x3eb   :  { %v1397_v37 = vsel %vm1396_vm11, %v1385_v9, %v1393_v29 }
 0x3ec   :  { %v1399_v8 = vsel %vm1398_vm12, %v1394_v14, %v1395_v15 }
 0x3ed   :  { %v1401_v32 = vsel %vm1400_vm13, %v1397_v37, %v1399_v8 }
 0x3ee   :  { %1407 = vst.msk [vmem:[%s2677_s3] sm:$0xf] %vm1405_vm14, %v1401_v32 }

</bundles_post_ra>
